<compile_context>
chip_gen: v6e
topology: v6e:2x2x1
jax: 0.10.0
libtpu: 0.0.40
codegen_flags: <defaults>
</compile_context>

<pallas_src>
import functools

import jax
import jax.numpy as jnp
from jax.experimental import pallas as pl
from jax.experimental.pallas import tpu as pltpu

_EPS = 1e-5
_VMEM_LIMIT = 32 * 1024 * 1024  # safe on v5e/v6e (128 MiB phys) and v7x (64 MiB phys)


def _round_up(x, m):
    return (x + m - 1) // m * m


def _pick_tile(m, cap=256):
    t = min(m, cap)
    while m % t:
        t -= 1
    return t


# --------------------------------------------------------------------------
# bn1 batch statistics: tiled reduction (sum, sumsq) over rows, per channel.
# --------------------------------------------------------------------------

def _bn_stats_kernel(x_ref, o_ref):
    @pl.when(pl.program_id(0) == 0)
    def _init():
        o_ref[...] = jnp.zeros_like(o_ref)

    x = x_ref[...]
    o_ref[0:1, :] += jnp.sum(x, axis=0, keepdims=True)
    o_ref[1:2, :] += jnp.sum(x * x, axis=0, keepdims=True)


def bn_batch_stats(x2d):
    m, c = x2d.shape
    tm = _pick_tile(m, 256)
    return pl.pallas_call(
        _bn_stats_kernel,
        out_shape=jax.ShapeDtypeStruct((2, c), jnp.float32),
        grid=(m // tm,),
        in_specs=[pl.BlockSpec((tm, c), lambda i: (i, 0))],
        out_specs=pl.BlockSpec((2, c), lambda i: (0, 0)),
        compiler_params=pltpu.CompilerParams(
            dimension_semantics=("arbitrary",)),
    )(x2d)


# --------------------------------------------------------------------------
# Kernel A: bn1 + relu -> conv1 (3x3, stride) + fused 1x1 shortcut + bn2 stats
# --------------------------------------------------------------------------

def _block_a_kernel(xs_ref, mask_ref, scale_ref, shift_ref, w_ref,
                    o_ref, stats_ref, *, kprime, oh, ow, planes, cin,
                    identity_residual, compute_dtype):
    x = xs_ref[0]                                            # (hs, ws, c2) f32
    # bn1 + relu prologue; mask restores zero padding of the conv input.
    act = jnp.maximum(x * scale_ref[...] + shift_ref[...], 0.0) * mask_ref[...]

    nout = o_ref.shape[-1]
    acc = jnp.zeros((oh * ow, nout), jnp.float32)
    for ry in range(kprime):                                 # in-VMEM tap GEMMs
        for rx in range(kprime):
            a_t = act[ry:ry + oh, rx:rx + ow, :].reshape(oh * ow, -1)
            w_t = w_ref[ry * kprime + rx]                    # (c2, nout)
            acc += jnp.dot(a_t.astype(compute_dtype),
                           w_t.astype(compute_dtype),
                           preferred_element_type=jnp.float32)
    o_ref[0] = acc                                           # lane-dense store

    if identity_residual:
        # Identity shortcut: pass the *raw* (pre-BN) input through the residual
        # columns (stride == 1 and cin == planes in this case).
        res = x[1:1 + oh, 1:1 + ow, :].reshape(oh * ow, cin)
        o_ref[0, :, planes:planes + cin] = res

    # Per-image partial sums for bn2 statistics (fused; no extra HBM pass).
    stats_ref[0, 0:1, :] = jnp.sum(acc, axis=0, keepdims=True)
    stats_ref[0, 1:2, :] = jnp.sum(acc * acc, axis=0, keepdims=True)


def block_a_call(xs, mask, scale, shift, w_taps, *, kprime, oh, ow, planes,
                 cin, identity_residual, compute_dtype):
    n, hs, ws, c2 = xs.shape
    t, _, nout_pad = w_taps.shape
    kernel = functools.partial(
        _block_a_kernel, kprime=kprime, oh=oh, ow=ow, planes=planes, cin=cin,
        identity_residual=identity_residual, compute_dtype=compute_dtype)
    return pl.pallas_call(
        kernel,
        out_shape=(jax.ShapeDtypeStruct((n, oh * ow, nout_pad), jnp.float32),
                   jax.ShapeDtypeStruct((n, 2, nout_pad), jnp.float32)),
        grid=(n,),
        in_specs=[
            pl.BlockSpec((1, hs, ws, c2), lambda i: (i, 0, 0, 0)),
            pl.BlockSpec((hs, ws, c2), lambda i: (0, 0, 0)),
            pl.BlockSpec((1, 1, c2), lambda i: (0, 0, 0)),
            pl.BlockSpec((1, 1, c2), lambda i: (0, 0, 0)),
            pl.BlockSpec((t, c2, nout_pad), lambda i: (0, 0, 0)),
        ],
        out_specs=(pl.BlockSpec((1, oh * ow, nout_pad), lambda i: (i, 0, 0)),
                   pl.BlockSpec((1, 2, nout_pad), lambda i: (i, 0, 0))),
        compiler_params=pltpu.CompilerParams(
            dimension_semantics=("parallel",),
            vmem_limit_bytes=_VMEM_LIMIT),
    )(xs, mask, scale, shift, w_taps)


# --------------------------------------------------------------------------
# Kernel B: bn2 + relu -> conv2 (3x3, stride 1) + residual add
# --------------------------------------------------------------------------

def _block_b_kernel(a_ref, scale_ref, shift_ref, w_ref, o_ref, pad_ref, *,
                    oh, ow, planes, compute_dtype):
    a_in = a_ref[0]                                          # (oh*ow, nout) f32
    h1 = a_in[:, 0:planes]
    res = a_in[:, planes:2 * planes]
    # bn2 + relu prologue.
    act = jnp.maximum(h1 * scale_ref[...] + shift_ref[...], 0.0)

    # Zero-padded activation in VMEM scratch for the 3x3 taps.
    pad_ref[...] = jnp.zeros_like(pad_ref)
    pad_ref[1:oh + 1, 1:ow + 1, :] = act.reshape(oh, ow, planes)

    nout = o_ref.shape[-1]
    acc = jnp.zeros((oh * ow, nout), jnp.float32)
    for dy in range(3):
        for dx in range(3):
            a_t = pad_ref[dy:dy + oh, dx:dx + ow, :].reshape(oh * ow, planes)
            acc += jnp.dot(a_t.astype(compute_dtype),
                           w_ref[dy * 3 + dx].astype(compute_dtype),
                           preferred_element_type=jnp.float32)
    o_ref[0] = acc
    # Residual add fused into the epilogue (kept in f32).
    o_ref[0, :, 0:planes] = acc[:, 0:planes] + res


def block_b_call(a_out, scale, shift, w_taps, *, oh, ow, planes, compute_dtype):
    n, _, nout_pad = a_out.shape
    kernel = functools.partial(_block_b_kernel, oh=oh, ow=ow, planes=planes,
                               compute_dtype=compute_dtype)
    return pl.pallas_call(
        kernel,
        out_shape=jax.ShapeDtypeStruct((n, oh * ow, nout_pad), jnp.float32),
        grid=(n,),
        in_specs=[
            pl.BlockSpec((1, oh * ow, nout_pad), lambda i: (i, 0, 0)),
            pl.BlockSpec((1, planes), lambda i: (0, 0)),
            pl.BlockSpec((1, planes), lambda i: (0, 0)),
            pl.BlockSpec((9, planes, nout_pad), lambda i: (0, 0, 0)),
        ],
        out_specs=pl.BlockSpec((1, oh * ow, nout_pad), lambda i: (i, 0, 0)),
        scratch_shapes=[pltpu.VMEM((oh + 2, ow + 2, planes), jnp.float32)],
        compiler_params=pltpu.CompilerParams(
            dimension_semantics=("parallel",),
            vmem_limit_bytes=_VMEM_LIMIT),
    )(a_out, scale, shift, w_taps)


# --------------------------------------------------------------------------
# XLA-side preparation (pure data movement / tiny per-channel math)
# --------------------------------------------------------------------------

def space_to_depth_pad(x_nhwc, stride, pad=1):
    """Zero-pad spatially by `pad`, then fold an s x s grid into channels
    (identity when stride == 1). Channel order: (py, px, ci)."""
    n, h, w, c = x_nhwc.shape
    xp = jnp.pad(x_nhwc, ((0, 0), (pad, pad), (pad, pad), (0, 0)))
    hp, wp = h + 2 * pad, w + 2 * pad
    assert hp % stride == 0 and wp % stride == 0
    hs, ws = hp // stride, wp // stride
    xs = xp.reshape(n, hs, stride, ws, stride, c)
    xs = jnp.transpose(xs, (0, 1, 3, 2, 4, 5))
    return xs.reshape(n, hs, ws, stride * stride * c)


def prep_conv1_weights(w1_oihw, wsc_oihw, stride, nout_pad):
    """(Cout,Cin,3,3) [+ optional 1x1 shortcut] -> per-tap (T, s*s*Cin, nout_pad)
    matrices for the space-to-depth'd stride-1 formulation.  Conv1 occupies output
    columns [0:planes]; the shortcut is fused into the center tap at columns
    [planes:2*planes]."""
    planes, cin, kh, kw = w1_oihw.shape
    s = stride
    kprime = (kh - 1) // s + 1
    c2 = s * s * cin
    w1 = jnp.transpose(w1_oihw, (2, 3, 1, 0)).astype(jnp.float32)   # (3,3,cin,planes)
    taps = []
    for ry in range(kprime):
        for rx in range(kprime):
            wt = jnp.zeros((c2, nout_pad), jnp.float32)
            for py in range(s):
                for px in range(s):
                    dy, dx = ry * s + py, rx * s + px
                    if dy < kh and dx < kw:
                        r0 = (py * s + px) * cin
                        wt = wt.at[r0:r0 + cin, 0:planes].set(w1[dy, dx])
            taps.append(wt)
    w_taps = jnp.stack(taps, axis=0)
    if wsc_oihw is not None:
        # The 1x1/stride-s shortcut reads exactly the center tap (dy = dx = 1).
        dy = dx = 1
        ry, py = dy // s, dy % s
        rx, px = dx // s, dx % s
        r0 = (py * s + px) * cin
        wsc = jnp.transpose(wsc_oihw[:, :, 0, 0], (1, 0)).astype(jnp.float32)
        w_taps = w_taps.at[ry * kprime + rx, r0:r0 + cin,
                           planes:2 * planes].set(wsc)
    return w_taps, kprime


def prep_conv2_weights(w2_oihw, nout_pad):
    planes = w2_oihw.shape[0]
    w2 = jnp.transpose(w2_oihw, (2, 3, 1, 0)).astype(jnp.float32)   # (3,3,planes,planes)
    w = jnp.zeros((9, planes, nout_pad), jnp.float32)
    for t in range(9):
        w = w.at[t, :, 0:planes].set(w2[t // 3, t % 3])
    return w


def _bn_scale_shift(gamma, beta, mean, var):
    scale = gamma * jax.lax.rsqrt(var + _EPS)
    return scale, beta - mean * scale


# --------------------------------------------------------------------------
# Full PreActBlock forward
# --------------------------------------------------------------------------

@functools.partial(jax.jit, static_argnums=(2, 3))
def preact_block_forward(x_nhwc, params, stride, compute_dtype):
    n, h, w, cin = x_nhwc.shape
    planes = params["w1"].shape[0]
    s = stride
    assert h % s == 0 and w % s == 0 and (h + 2) % s == 0 and (w + 2) % s == 0
    oh = (h + 2 - 3) // s + 1
    ow = (w + 2 - 3) // s + 1
    nout_pad = max(128, _round_up(2 * planes, 128))
    has_projection = "w_sc" in params

    # bn1 statistics (training-mode biased batch stats), tiled Pallas reduction.
    m0 = n * h * w
    sums1 = bn_batch_stats(x_nhwc.reshape(m0, cin))
    mean1 = sums1[0] / m0
    var1 = sums1[1] / m0 - mean1 * mean1
    scale1, shift1 = _bn_scale_shift(params["gamma1"], params["beta1"],
                                     mean1, var1)
    c2 = s * s * cin
    scale1 = jnp.tile(scale1, s * s).reshape(1, 1, c2)
    shift1 = jnp.tile(shift1, s * s).reshape(1, 1, c2)

    # Kernel-A inputs: padded (+ space-to-depth if strided) raw x and a border
    # mask so that the in-kernel bn1+relu prologue reproduces the zero padding.
    xs = space_to_depth_pad(x_nhwc, s)
    mask = space_to_depth_pad(jnp.ones((1, h, w, cin), jnp.float32), s)[0]
    w_a, kprime = prep_conv1_weights(
        params["w1"], params["w_sc"] if has_projection else None, s, nout_pad)

    a_out, a_stats = block_a_call(
        xs, mask, scale1, shift1, w_a, kprime=kprime, oh=oh, ow=ow,
        planes=planes, cin=cin, identity_residual=not has_projection,
        compute_dtype=compute_dtype)

    # bn2 scale/shift from the fused per-image statistics (tiny per-channel math).
    m1 = n * oh * ow
    ssum = jnp.sum(a_stats, axis=0)
    mean2 = ssum[0, :planes] / m1
    var2 = ssum[1, :planes] / m1 - mean2 * mean2
    scale2, shift2 = _bn_scale_shift(params["gamma2"], params["beta2"],
                                     mean2, var2)

    w_b = prep_conv2_weights(params["w2"], nout_pad)
    y = block_b_call(a_out, scale2.reshape(1, planes),
                     shift2.reshape(1, planes), w_b, oh=oh, ow=ow,
                     planes=planes, compute_dtype=compute_dtype)
    return y[:, :, :planes].reshape(n, oh, ow, planes)


# --------------------------------------------------------------------------
# Parameters and pure-JAX reference
# --------------------------------------------------------------------------

def init_params(key, in_planes, planes, stride):
    ks = jax.random.split(key, 7)
    params = {
        "gamma1": 1.0 + 0.1 * jax.random.normal(ks[0], (in_planes,), jnp.float32),
        "beta1": 0.1 * jax.random.normal(ks[1], (in_planes,), jnp.float32),
        "w1": 0.1 * jax.random.normal(ks[2], (planes, in_planes, 3, 3), jnp.float32),
        "gamma2": 1.0 + 0.1 * jax.random.normal(ks[3], (planes,), jnp.float32),
        "beta2": 0.1 * jax.random.normal(ks[4], (planes,), jnp.float32),
        "w2": 0.1 * jax.random.normal(ks[5], (planes, planes, 3, 3), jnp.float32),
    }
    if stride != 1 or in_planes != planes:
        params["w_sc"] = 0.1 * jax.random.normal(
            ks[6], (planes, in_planes, 1, 1), jnp.float32)
    return params


def _bn_relu_ref(x, gamma, beta):
    mean = x.mean(axis=(0, 1, 2), keepdims=True)
    var = jnp.square(x - mean).mean(axis=(0, 1, 2), keepdims=True)
    return jnp.maximum((x - mean) * jax.lax.rsqrt(var + _EPS) * gamma + beta, 0.0)


def _conv_ref(x, w_oihw, stride, pad, compute_dtype):
    return jax.lax.conv_general_dilated(
        x.astype(compute_dtype),
        jnp.transpose(w_oihw, (2, 3, 1, 0)).astype(compute_dtype),
        window_strides=(stride, stride), padding=[(pad, pad), (pad, pad)],
        dimension_numbers=("NHWC", "HWIO", "NHWC"),
        preferred_element_type=jnp.float32)


@functools.partial(jax.jit, static_argnums=(2, 3))
def ref_forward(x_nhwc, params, stride, compute_dtype):
    out = _bn_relu_ref(x_nhwc, params["gamma1"], params["beta1"])
    if "w_sc" in params:
        shortcut = _conv_ref(out, params["w_sc"], stride, 0, compute_dtype)
    else:
        shortcut = x_nhwc
    h1 = _conv_ref(out, params["w1"], stride, 1, compute_dtype)
    h2 = _bn_relu_ref(h1, params["gamma2"], params["beta2"])
    return _conv_ref(h2, params["w2"], 1, 1, compute_dtype) + shortcut


# --------------------------------------------------------------------------
# main
# --------------------------------------------------------------------------

def _run_case(key, *, n, in_planes, planes, h, w, stride, dtypes):
    kx, kp = jax.random.split(key)
    # PyTorch-convention NCHW input, transposed to the kernels' NHWC layout.
    x_nchw = jax.random.normal(kx, (n, in_planes, h, w), jnp.float32)
    x_nhwc = jnp.transpose(x_nchw, (0, 2, 3, 1))
    params = init_params(kp, in_planes, planes, stride)

    for cdt, atol, rtol in dtypes:
        y = jax.block_until_ready(
            preact_block_forward(x_nhwc, params, stride, cdt))
        y_ref = jax.block_until_ready(ref_forward(x_nhwc, params, stride, cdt))
        assert y.shape == (n, h // stride, w // stride, planes), y.shape
        err = float(jnp.max(jnp.abs(y - y_ref)))
        assert jnp.allclose(y, y_ref, atol=atol, rtol=rtol), (str(cdt), err)


if __name__ == "__main__":
    key = jax.random.PRNGKey(0)
    k1, k2 = jax.random.split(key)

    # Case 1: projection shortcut (stride 2, channel change). NCHW input [2,4,16,16].
    #   f32 compute -> tight check; bf16 MXU operands (the recommended fast path on
    #   v5e/v6e/v7x) -> checked against a bf16-input reference with f32 accumulation.
    _run_case(k1, n=2, in_planes=4, planes=8, h=16, w=16, stride=2,
              dtypes=((jnp.float32, 1e-4, 1e-4), (jnp.bfloat16, 2e-2, 2e-2)))

    # Case 2: identity shortcut (stride 1, in_planes == planes).
    _run_case(k2, n=2, in_planes=8, planes=8, h=8, w=8, stride=1,
              dtypes=((jnp.float32, 1e-4, 1e-4),))

    print("KERNEL_OK")
</pallas_src>

<mosaic_0001>
module attributes {stable_mosaic.version = 11 : i64} {
  func.func @_bn_stats_kernel(%arg0: i32, %arg1: memref<256x4xf32, #tpu.memory_space<vmem>>, %arg2: memref<2x4xf32, #tpu.memory_space<vmem>>) attributes {dimension_semantics = [#tpu.dimension_semantics<arbitrary>], iteration_bounds = array<i64: 2>, scalar_prefetch = 0 : i64, scratch_operands = 0 : i64, tpu.core_type = #tpu.core_type<tc>, window_params = [{transform_indices = @transform_0, window_bounds = array<i64: 256, 4>}, {pipeline_mode = #tpu.pipeline_mode<synchronous>, transform_indices = @transform_1, window_bounds = array<i64: 2, 4>}]} {
    %c0_i32 = arith.constant 0 : i32
    %0 = arith.cmpi eq, %arg0, %c0_i32 : i32
    %1 = arith.extui %0 : i1 to i32
    %c0_i32_0 = arith.constant 0 : i32
    %2 = arith.cmpi ne, %1, %c0_i32_0 : i32
    scf.if %2 {
      %cst_10 = arith.constant 0.000000e+00 : f32
      %15 = vector.broadcast %cst_10 : f32 to vector<2x4xf32>
      %c0_11 = arith.constant 0 : index
      %c0_12 = arith.constant 0 : index
      %16 = vector.load %arg2[%c0_11, %c0_12] : memref<2x4xf32, #tpu.memory_space<vmem>>, vector<2x4xf32>
      tpu.vector_store %arg2[%c0_11, %c0_12], %15 {strides = array<i32>} : memref<2x4xf32, #tpu.memory_space<vmem>>, vector<2x4xf32>,
    } else {
    }
    %c0 = arith.constant 0 : index
    %c0_1 = arith.constant 0 : index
    %3 = vector.load %arg1[%c0, %c0_1] : memref<256x4xf32, #tpu.memory_space<vmem>>, vector<256x4xf32>
    %c0_2 = arith.constant 0 : index
    %c0_3 = arith.constant 0 : index
    %4 = vector.load %arg2[%c0_2, %c0_3] : memref<2x4xf32, #tpu.memory_space<vmem>>, vector<1x4xf32>
    %cst = arith.constant dense<0.000000e+00> : vector<4xf32>
    %5 = vector.multi_reduction <add>, %3, %cst [0] : vector<256x4xf32> to vector<4xf32>
    %6 = vector.shape_cast %5 : vector<4xf32> to vector<1x4xf32>
    %7 = arith.addf %4, %6 : vector<1x4xf32>
    %c0_4 = arith.constant 0 : index
    %c0_5 = arith.constant 0 : index
    %8 = vector.load %arg2[%c0_4, %c0_5] : memref<2x4xf32, #tpu.memory_space<vmem>>, vector<1x4xf32>
    tpu.vector_store %arg2[%c0_4, %c0_5], %7 {strides = array<i32>} : memref<2x4xf32, #tpu.memory_space<vmem>>, vector<1x4xf32>,
    %c1 = arith.constant 1 : index
    %c0_6 = arith.constant 0 : index
    %9 = vector.load %arg2[%c1, %c0_6] : memref<2x4xf32, #tpu.memory_space<vmem>>, vector<1x4xf32>
    %10 = arith.mulf %3, %3 : vector<256x4xf32>
    %cst_7 = arith.constant dense<0.000000e+00> : vector<4xf32>
    %11 = vector.multi_reduction <add>, %10, %cst_7 [0] : vector<256x4xf32> to vector<4xf32>
    %12 = vector.shape_cast %11 : vector<4xf32> to vector<1x4xf32>
    %13 = arith.addf %9, %12 : vector<1x4xf32>
    %c1_8 = arith.constant 1 : index
    %c0_9 = arith.constant 0 : index
    %14 = vector.load %arg2[%c1_8, %c0_9] : memref<2x4xf32, #tpu.memory_space<vmem>>, vector<1x4xf32>
    tpu.vector_store %arg2[%c1_8, %c0_9], %13 {strides = array<i32>} : memref<2x4xf32, #tpu.memory_space<vmem>>, vector<1x4xf32>,
    return
  }
  func.func @transform_0(%arg0: i32) -> (i32, i32) {
    %c0_i32 = arith.constant 0 : i32
    %c0_i32_0 = arith.constant 0 : i32
    return %arg0, %c0_i32 : i32, i32
  }
  func.func @transform_1(%arg0: i32) -> (i32, i32) {
    %c0_i32 = arith.constant 0 : i32
    %c0_i32_0 = arith.constant 0 : i32
    %c0_i32_1 = arith.constant 0 : i32
    return %c0_i32, %c0_i32_0 : i32, i32
  }
}

module attributes {stable_mosaic.version = 11 : i64} {
  func.func @_block_a_kernel(%arg0: i32, %arg1: memref<1x9x9x16xf32, #tpu.memory_space<vmem>>, %arg2: memref<9x9x16xf32, #tpu.memory_space<vmem>>, %arg3: memref<1x1x16xf32, #tpu.memory_space<vmem>>, %arg4: memref<1x1x16xf32, #tpu.memory_space<vmem>>, %arg5: memref<4x16x128xf32, #tpu.memory_space<vmem>>, %arg6: memref<1x64x128xf32, #tpu.memory_space<vmem>>, %arg7: memref<1x2x128xf32, #tpu.memory_space<vmem>>) attributes {dimension_semantics = [#tpu.dimension_semantics<parallel>], iteration_bounds = array<i64: 2>, scalar_prefetch = 0 : i64, scratch_operands = 0 : i64, tpu.core_type = #tpu.core_type<tc>, window_params = [{transform_indices = @transform_0, window_bounds = array<i64: 1, 9, 9, 16>}, {pipeline_mode = #tpu.pipeline_mode<synchronous>, transform_indices = @transform_1, window_bounds = array<i64: 9, 9, 16>}, {pipeline_mode = #tpu.pipeline_mode<synchronous>, transform_indices = @transform_2, window_bounds = array<i64: 1, 1, 16>}, {pipeline_mode = #tpu.pipeline_mode<synchronous>, transform_indices = @transform_3, window_bounds = array<i64: 1, 1, 16>}, {pipeline_mode = #tpu.pipeline_mode<synchronous>, transform_indices = @transform_4, window_bounds = array<i64: 4, 16, 128>}, {transform_indices = @transform_5, window_bounds = array<i64: 1, 64, 128>}, {transform_indices = @transform_6, window_bounds = array<i64: 1, 2, 128>}]} {
    %c0 = arith.constant 0 : index
    %c0_0 = arith.constant 0 : index
    %c0_1 = arith.constant 0 : index
    %c0_2 = arith.constant 0 : index
    %0 = vector.load %arg1[%c0, %c0_0, %c0_1, %c0_2] : memref<1x9x9x16xf32, #tpu.memory_space<vmem>>, vector<1x9x9x16xf32>
    %1 = vector.shape_cast %0 : vector<1x9x9x16xf32> to vector<9x9x16xf32>
    %c0_3 = arith.constant 0 : index
    %c0_4 = arith.constant 0 : index
    %c0_5 = arith.constant 0 : index
    %2 = vector.load %arg3[%c0_3, %c0_4, %c0_5] : memref<1x1x16xf32, #tpu.memory_space<vmem>>, vector<1x1x16xf32>
    %3 = vector.broadcast %2 : vector<1x1x16xf32> to vector<9x9x16xf32>
    %4 = arith.mulf %1, %3 : vector<9x9x16xf32>
    %c0_6 = arith.constant 0 : index
    %c0_7 = arith.constant 0 : index
    %c0_8 = arith.constant 0 : index
    %5 = vector.load %arg4[%c0_6, %c0_7, %c0_8] : memref<1x1x16xf32, #tpu.memory_space<vmem>>, vector<1x1x16xf32>
    %6 = vector.broadcast %5 : vector<1x1x16xf32> to vector<9x9x16xf32>
    %7 = arith.addf %4, %6 : vector<9x9x16xf32>
    %cst = arith.constant 0.000000e+00 : f32
    %8 = vector.broadcast %cst : f32 to vector<9x9x16xf32>
    %9 = arith.maximumf %7, %8 : vector<9x9x16xf32>
    %c0_9 = arith.constant 0 : index
    %c0_10 = arith.constant 0 : index
    %c0_11 = arith.constant 0 : index
    %10 = vector.load %arg2[%c0_9, %c0_10, %c0_11] : memref<9x9x16xf32, #tpu.memory_space<vmem>>, vector<9x9x16xf32>
    %11 = arith.mulf %9, %10 : vector<9x9x16xf32>
    %cst_12 = arith.constant 0.000000e+00 : f32
    %12 = vector.broadcast %cst_12 : f32 to vector<64x128xf32>
    %13 = vector.extract_strided_slice %11 {offsets = [0, 0, 0], sizes = [8, 8, 16], strides = [1, 1, 1]} : vector<9x9x16xf32> to vector<8x8x16xf32>
    %14 = vector.shape_cast %13 : vector<8x8x16xf32> to vector<64x16xf32>
    %c0_13 = arith.constant 0 : index
    %c0_14 = arith.constant 0 : index
    %c0_15 = arith.constant 0 : index
    %15 = vector.load %arg5[%c0_13, %c0_14, %c0_15] : memref<4x16x128xf32, #tpu.memory_space<vmem>>, vector<1x16x128xf32>
    %16 = vector.shape_cast %15 : vector<1x16x128xf32> to vector<16x128xf32>
    %cst_16 = arith.constant dense<0.000000e+00> : vector<64x128xf32>
    %17 = tpu.matmul %14, %16, %cst_16 {dimension_numbers = #tpu.dot_dimension_numbers<[1], [0], [0], [1], [0, 0, 1, 1], [], []>} : vector<64x16xf32>, vector<16x128xf32>, vector<64x128xf32> -> vector<64x128xf32>
    %18 = arith.addf %12, %17 : vector<64x128xf32>
    %19 = vector.extract_strided_slice %11 {offsets = [0, 1, 0], sizes = [8, 8, 16], strides = [1, 1, 1]} : vector<9x9x16xf32> to vector<8x8x16xf32>
    %20 = vector.shape_cast %19 : vector<8x8x16xf32> to vector<64x16xf32>
    %c1 = arith.constant 1 : index
    %c0_17 = arith.constant 0 : index
    %c0_18 = arith.constant 0 : index
    %21 = vector.load %arg5[%c1, %c0_17, %c0_18] : memref<4x16x128xf32, #tpu.memory_space<vmem>>, vector<1x16x128xf32>
    %22 = vector.shape_cast %21 : vector<1x16x128xf32> to vector<16x128xf32>
    %cst_19 = arith.constant dense<0.000000e+00> : vector<64x128xf32>
    %23 = tpu.matmul %20, %22, %cst_19 {dimension_numbers = #tpu.dot_dimension_numbers<[1], [0], [0], [1], [0, 0, 1, 1], [], []>} : vector<64x16xf32>, vector<16x128xf32>, vector<64x128xf32> -> vector<64x128xf32>
    %24 = arith.addf %18, %23 : vector<64x128xf32>
    %25 = vector.extract_strided_slice %11 {offsets = [1, 0, 0], sizes = [8, 8, 16], strides = [1, 1, 1]} : vector<9x9x16xf32> to vector<8x8x16xf32>
    %26 = vector.shape_cast %25 : vector<8x8x16xf32> to vector<64x16xf32>
    %c2 = arith.constant 2 : index
    %c0_20 = arith.constant 0 : index
    %c0_21 = arith.constant 0 : index
    %27 = vector.load %arg5[%c2, %c0_20, %c0_21] : memref<4x16x128xf32, #tpu.memory_space<vmem>>, vector<1x16x128xf32>
    %28 = vector.shape_cast %27 : vector<1x16x128xf32> to vector<16x128xf32>
    %cst_22 = arith.constant dense<0.000000e+00> : vector<64x128xf32>
    %29 = tpu.matmul %26, %28, %cst_22 {dimension_numbers = #tpu.dot_dimension_numbers<[1], [0], [0], [1], [0, 0, 1, 1], [], []>} : vector<64x16xf32>, vector<16x128xf32>, vector<64x128xf32> -> vector<64x128xf32>
    %30 = arith.addf %24, %29 : vector<64x128xf32>
    %31 = vector.extract_strided_slice %11 {offsets = [1, 1, 0], sizes = [8, 8, 16], strides = [1, 1, 1]} : vector<9x9x16xf32> to vector<8x8x16xf32>
    %32 = vector.shape_cast %31 : vector<8x8x16xf32> to vector<64x16xf32>
    %c3 = arith.constant 3 : index
    %c0_23 = arith.constant 0 : index
    %c0_24 = arith.constant 0 : index
    %33 = vector.load %arg5[%c3, %c0_23, %c0_24] : memref<4x16x128xf32, #tpu.memory_space<vmem>>, vector<1x16x128xf32>
    %34 = vector.shape_cast %33 : vector<1x16x128xf32> to vector<16x128xf32>
    %cst_25 = arith.constant dense<0.000000e+00> : vector<64x128xf32>
    %35 = tpu.matmul %32, %34, %cst_25 {dimension_numbers = #tpu.dot_dimension_numbers<[1], [0], [0], [1], [0, 0, 1, 1], [], []>} : vector<64x16xf32>, vector<16x128xf32>, vector<64x128xf32> -> vector<64x128xf32>
    %36 = arith.addf %30, %35 : vector<64x128xf32>
    %c0_26 = arith.constant 0 : index
    %c0_27 = arith.constant 0 : index
    %c0_28 = arith.constant 0 : index
    %37 = vector.load %arg6[%c0_26, %c0_27, %c0_28] : memref<1x64x128xf32, #tpu.memory_space<vmem>>, vector<1x64x128xf32>
    %38 = vector.shape_cast %37 : vector<1x64x128xf32> to vector<64x128xf32>
    %39 = vector.shape_cast %36 : vector<64x128xf32> to vector<1x64x128xf32>
    tpu.vector_store %arg6[%c0_26, %c0_27, %c0_28], %39 {strides = array<i32>} : memref<1x64x128xf32, #tpu.memory_space<vmem>>, vector<1x64x128xf32>,
    %cst_29 = arith.constant dense<0.000000e+00> : vector<128xf32>
    %40 = vector.multi_reduction <add>, %36, %cst_29 [0] : vector<64x128xf32> to vector<128xf32>
    %41 = vector.shape_cast %40 : vector<128xf32> to vector<1x128xf32>
    %c0_30 = arith.constant 0 : index
    %c0_31 = arith.constant 0 : index
    %c0_32 = arith.constant 0 : index
    %42 = vector.load %arg7[%c0_30, %c0_31, %c0_32] : memref<1x2x128xf32, #tpu.memory_space<vmem>>, vector<1x1x128xf32>
    %43 = vector.shape_cast %42 : vector<1x1x128xf32> to vector<1x128xf32>
    %44 = vector.shape_cast %41 : vector<1x128xf32> to vector<1x1x128xf32>
    tpu.vector_store %arg7[%c0_30, %c0_31, %c0_32], %44 {strides = array<i32>} : memref<1x2x128xf32, #tpu.memory_space<vmem>>, vector<1x1x128xf32>,
    %45 = arith.mulf %36, %36 : vector<64x128xf32>
    %cst_33 = arith.constant dense<0.000000e+00> : vector<128xf32>
    %46 = vector.multi_reduction <add>, %45, %cst_33 [0] : vector<64x128xf32> to vector<128xf32>
    %47 = vector.shape_cast %46 : vector<128xf32> to vector<1x128xf32>
    %c0_34 = arith.constant 0 : index
    %c1_35 = arith.constant 1 : index
    %c0_36 = arith.constant 0 : index
    %48 = vector.load %arg7[%c0_34, %c1_35, %c0_36] : memref<1x2x128xf32, #tpu.memory_space<vmem>>, vector<1x1x128xf32>
    %49 = vector.shape_cast %48 : vector<1x1x128xf32> to vector<1x128xf32>
    %50 = vector.shape_cast %47 : vector<1x128xf32> to vector<1x1x128xf32>
    tpu.vector_store %arg7[%c0_34, %c1_35, %c0_36], %50 {strides = array<i32>} : memref<1x2x128xf32, #tpu.memory_space<vmem>>, vector<1x1x128xf32>,
    return
  }
  func.func @transform_0(%arg0: i32) -> (i32, i32, i32, i32) {
    %c0_i32 = arith.constant 0 : i32
    %c0_i32_0 = arith.constant 0 : i32
    %c0_i32_1 = arith.constant 0 : i32
    %c0_i32_2 = arith.constant 0 : i32
    return %arg0, %c0_i32, %c0_i32_0, %c0_i32_1 : i32, i32, i32, i32
  }
  func.func @transform_1(%arg0: i32) -> (i32, i32, i32) {
    %c0_i32 = arith.constant 0 : i32
    %c0_i32_0 = arith.constant 0 : i32
    %c0_i32_1 = arith.constant 0 : i32
    %c0_i32_2 = arith.constant 0 : i32
    return %c0_i32, %c0_i32_0, %c0_i32_1 : i32, i32, i32
  }
  func.func @transform_2(%arg0: i32) -> (i32, i32, i32) {
    %c0_i32 = arith.constant 0 : i32
    %c0_i32_0 = arith.constant 0 : i32
    %c0_i32_1 = arith.constant 0 : i32
    %c0_i32_2 = arith.constant 0 : i32
    return %c0_i32, %c0_i32_0, %c0_i32_1 : i32, i32, i32
  }
  func.func @transform_3(%arg0: i32) -> (i32, i32, i32) {
    %c0_i32 = arith.constant 0 : i32
    %c0_i32_0 = arith.constant 0 : i32
    %c0_i32_1 = arith.constant 0 : i32
    %c0_i32_2 = arith.constant 0 : i32
    return %c0_i32, %c0_i32_0, %c0_i32_1 : i32, i32, i32
  }
  func.func @transform_4(%arg0: i32) -> (i32, i32, i32) {
    %c0_i32 = arith.constant 0 : i32
    %c0_i32_0 = arith.constant 0 : i32
    %c0_i32_1 = arith.constant 0 : i32
    %c0_i32_2 = arith.constant 0 : i32
    return %c0_i32, %c0_i32_0, %c0_i32_1 : i32, i32, i32
  }
  func.func @transform_5(%arg0: i32) -> (i32, i32, i32) {
    %c0_i32 = arith.constant 0 : i32
    %c0_i32_0 = arith.constant 0 : i32
    %c0_i32_1 = arith.constant 0 : i32
    return %arg0, %c0_i32, %c0_i32_0 : i32, i32, i32
  }
  func.func @transform_6(%arg0: i32) -> (i32, i32, i32) {
    %c0_i32 = arith.constant 0 : i32
    %c0_i32_0 = arith.constant 0 : i32
    %c0_i32_1 = arith.constant 0 : i32
    return %arg0, %c0_i32, %c0_i32_0 : i32, i32, i32
  }
}

module attributes {stable_mosaic.version = 11 : i64} {
  func.func @_block_b_kernel(%arg0: i32, %arg1: memref<1x64x128xf32, #tpu.memory_space<vmem>>, %arg2: memref<1x8xf32, #tpu.memory_space<vmem>>, %arg3: memref<1x8xf32, #tpu.memory_space<vmem>>, %arg4: memref<9x8x128xf32, #tpu.memory_space<vmem>>, %arg5: memref<1x64x128xf32, #tpu.memory_space<vmem>>, %arg6: memref<10x10x8xf32, #tpu.memory_space<vmem>>) attributes {dimension_semantics = [#tpu.dimension_semantics<parallel>], iteration_bounds = array<i64: 2>, scalar_prefetch = 0 : i64, scratch_operands = 1 : i64, tpu.core_type = #tpu.core_type<tc>, window_params = [{transform_indices = @transform_0, window_bounds = array<i64: 1, 64, 128>}, {pipeline_mode = #tpu.pipeline_mode<synchronous>, transform_indices = @transform_1, window_bounds = array<i64: 1, 8>}, {pipeline_mode = #tpu.pipeline_mode<synchronous>, transform_indices = @transform_2, window_bounds = array<i64: 1, 8>}, {pipeline_mode = #tpu.pipeline_mode<synchronous>, transform_indices = @transform_3, window_bounds = array<i64: 9, 8, 128>}, {transform_indices = @transform_4, window_bounds = array<i64: 1, 64, 128>}]} {
    %c0 = arith.constant 0 : index
    %c0_0 = arith.constant 0 : index
    %c0_1 = arith.constant 0 : index
    %0 = vector.load %arg1[%c0, %c0_0, %c0_1] : memref<1x64x128xf32, #tpu.memory_space<vmem>>, vector<1x64x128xf32>
    %1 = vector.shape_cast %0 : vector<1x64x128xf32> to vector<64x128xf32>
    %2 = vector.extract_strided_slice %1 {offsets = [0, 0], sizes = [64, 8], strides = [1, 1]} : vector<64x128xf32> to vector<64x8xf32>
    %3 = vector.extract_strided_slice %1 {offsets = [0, 8], sizes = [64, 8], strides = [1, 1]} : vector<64x128xf32> to vector<64x8xf32>
    %c0_2 = arith.constant 0 : index
    %c0_3 = arith.constant 0 : index
    %4 = vector.load %arg2[%c0_2, %c0_3] : memref<1x8xf32, #tpu.memory_space<vmem>>, vector<1x8xf32>
    %5 = vector.broadcast %4 : vector<1x8xf32> to vector<64x8xf32>
    %6 = arith.mulf %2, %5 : vector<64x8xf32>
    %c0_4 = arith.constant 0 : index
    %c0_5 = arith.constant 0 : index
    %7 = vector.load %arg3[%c0_4, %c0_5] : memref<1x8xf32, #tpu.memory_space<vmem>>, vector<1x8xf32>
    %8 = vector.broadcast %7 : vector<1x8xf32> to vector<64x8xf32>
    %9 = arith.addf %6, %8 : vector<64x8xf32>
    %cst = arith.constant 0.000000e+00 : f32
    %10 = vector.broadcast %cst : f32 to vector<64x8xf32>
    %11 = arith.maximumf %9, %10 : vector<64x8xf32>
    %cst_6 = arith.constant 0.000000e+00 : f32
    %12 = vector.broadcast %cst_6 : f32 to vector<10x10x8xf32>
    %c0_7 = arith.constant 0 : index
    %c0_8 = arith.constant 0 : index
    %c0_9 = arith.constant 0 : index
    %13 = vector.load %arg6[%c0_7, %c0_8, %c0_9] : memref<10x10x8xf32, #tpu.memory_space<vmem>>, vector<10x10x8xf32>
    tpu.vector_store %arg6[%c0_7, %c0_8, %c0_9], %12 {strides = array<i32>} : memref<10x10x8xf32, #tpu.memory_space<vmem>>, vector<10x10x8xf32>,
    %14 = vector.shape_cast %11 : vector<64x8xf32> to vector<8x8x8xf32>
    %c1 = arith.constant 1 : index
    %c1_10 = arith.constant 1 : index
    %c0_11 = arith.constant 0 : index
    %15 = vector.load %arg6[%c1, %c1_10, %c0_11] : memref<10x10x8xf32, #tpu.memory_space<vmem>>, vector<8x8x8xf32>
    tpu.vector_store %arg6[%c1, %c1_10, %c0_11], %14 {strides = array<i32>} : memref<10x10x8xf32, #tpu.memory_space<vmem>>, vector<8x8x8xf32>,
    %cst_12 = arith.constant 0.000000e+00 : f32
    %16 = vector.broadcast %cst_12 : f32 to vector<64x128xf32>
    %c0_13 = arith.constant 0 : index
    %c0_14 = arith.constant 0 : index
    %c0_15 = arith.constant 0 : index
    %17 = vector.load %arg6[%c0_13, %c0_14, %c0_15] : memref<10x10x8xf32, #tpu.memory_space<vmem>>, vector<8x8x8xf32>
    %18 = vector.shape_cast %17 : vector<8x8x8xf32> to vector<64x8xf32>
    %c0_16 = arith.constant 0 : index
    %c0_17 = arith.constant 0 : index
    %c0_18 = arith.constant 0 : index
    %19 = vector.load %arg4[%c0_16, %c0_17, %c0_18] : memref<9x8x128xf32, #tpu.memory_space<vmem>>, vector<1x8x128xf32>
    %20 = vector.shape_cast %19 : vector<1x8x128xf32> to vector<8x128xf32>
    %cst_19 = arith.constant dense<0.000000e+00> : vector<64x128xf32>
    %21 = tpu.matmul %18, %20, %cst_19 {dimension_numbers = #tpu.dot_dimension_numbers<[1], [0], [0], [1], [0, 0, 1, 1], [], []>} : vector<64x8xf32>, vector<8x128xf32>, vector<64x128xf32> -> vector<64x128xf32>
    %22 = arith.addf %16, %21 : vector<64x128xf32>
    %c0_20 = arith.constant 0 : index
    %c1_21 = arith.constant 1 : index
    %c0_22 = arith.constant 0 : index
    %23 = vector.load %arg6[%c0_20, %c1_21, %c0_22] : memref<10x10x8xf32, #tpu.memory_space<vmem>>, vector<8x8x8xf32>
    %24 = vector.shape_cast %23 : vector<8x8x8xf32> to vector<64x8xf32>
    %c1_23 = arith.constant 1 : index
    %c0_24 = arith.constant 0 : index
    %c0_25 = arith.constant 0 : index
    %25 = vector.load %arg4[%c1_23, %c0_24, %c0_25] : memref<9x8x128xf32, #tpu.memory_space<vmem>>, vector<1x8x128xf32>
    %26 = vector.shape_cast %25 : vector<1x8x128xf32> to vector<8x128xf32>
    %cst_26 = arith.constant dense<0.000000e+00> : vector<64x128xf32>
    %27 = tpu.matmul %24, %26, %cst_26 {dimension_numbers = #tpu.dot_dimension_numbers<[1], [0], [0], [1], [0, 0, 1, 1], [], []>} : vector<64x8xf32>, vector<8x128xf32>, vector<64x128xf32> -> vector<64x128xf32>
    %28 = arith.addf %22, %27 : vector<64x128xf32>
    %c0_27 = arith.constant 0 : index
    %c2 = arith.constant 2 : index
    %c0_28 = arith.constant 0 : index
    %29 = vector.load %arg6[%c0_27, %c2, %c0_28] : memref<10x10x8xf32, #tpu.memory_space<vmem>>, vector<8x8x8xf32>
    %30 = vector.shape_cast %29 : vector<8x8x8xf32> to vector<64x8xf32>
    %c2_29 = arith.constant 2 : index
    %c0_30 = arith.constant 0 : index
    %c0_31 = arith.constant 0 : index
    %31 = vector.load %arg4[%c2_29, %c0_30, %c0_31] : memref<9x8x128xf32, #tpu.memory_space<vmem>>, vector<1x8x128xf32>
    %32 = vector.shape_cast %31 : vector<1x8x128xf32> to vector<8x128xf32>
    %cst_32 = arith.constant dense<0.000000e+00> : vector<64x128xf32>
    %33 = tpu.matmul %30, %32, %cst_32 {dimension_numbers = #tpu.dot_dimension_numbers<[1], [0], [0], [1], [0, 0, 1, 1], [], []>} : vector<64x8xf32>, vector<8x128xf32>, vector<64x128xf32> -> vector<64x128xf32>
    %34 = arith.addf %28, %33 : vector<64x128xf32>
    %c1_33 = arith.constant 1 : index
    %c0_34 = arith.constant 0 : index
    %c0_35 = arith.constant 0 : index
    %35 = vector.load %arg6[%c1_33, %c0_34, %c0_35] : memref<10x10x8xf32, #tpu.memory_space<vmem>>, vector<8x8x8xf32>
    %36 = vector.shape_cast %35 : vector<8x8x8xf32> to vector<64x8xf32>
    %c3 = arith.constant 3 : index
    %c0_36 = arith.constant 0 : index
    %c0_37 = arith.constant 0 : index
    %37 = vector.load %arg4[%c3, %c0_36, %c0_37] : memref<9x8x128xf32, #tpu.memory_space<vmem>>, vector<1x8x128xf32>
    %38 = vector.shape_cast %37 : vector<1x8x128xf32> to vector<8x128xf32>
    %cst_38 = arith.constant dense<0.000000e+00> : vector<64x128xf32>
    %39 = tpu.matmul %36, %38, %cst_38 {dimension_numbers = #tpu.dot_dimension_numbers<[1], [0], [0], [1], [0, 0, 1, 1], [], []>} : vector<64x8xf32>, vector<8x128xf32>, vector<64x128xf32> -> vector<64x128xf32>
    %40 = arith.addf %34, %39 : vector<64x128xf32>
    %c1_39 = arith.constant 1 : index
    %c1_40 = arith.constant 1 : index
    %c0_41 = arith.constant 0 : index
    %41 = vector.load %arg6[%c1_39, %c1_40, %c0_41] : memref<10x10x8xf32, #tpu.memory_space<vmem>>, vector<8x8x8xf32>
    %42 = vector.shape_cast %41 : vector<8x8x8xf32> to vector<64x8xf32>
    %c4 = arith.constant 4 : index
    %c0_42 = arith.constant 0 : index
    %c0_43 = arith.constant 0 : index
    %43 = vector.load %arg4[%c4, %c0_42, %c0_43] : memref<9x8x128xf32, #tpu.memory_space<vmem>>, vector<1x8x128xf32>
    %44 = vector.shape_cast %43 : vector<1x8x128xf32> to vector<8x128xf32>
    %cst_44 = arith.constant dense<0.000000e+00> : vector<64x128xf32>
    %45 = tpu.matmul %42, %44, %cst_44 {dimension_numbers = #tpu.dot_dimension_numbers<[1], [0], [0], [1], [0, 0, 1, 1], [], []>} : vector<64x8xf32>, vector<8x128xf32>, vector<64x128xf32> -> vector<64x128xf32>
    %46 = arith.addf %40, %45 : vector<64x128xf32>
    %c1_45 = arith.constant 1 : index
    %c2_46 = arith.constant 2 : index
    %c0_47 = arith.constant 0 : index
    %47 = vector.load %arg6[%c1_45, %c2_46, %c0_47] : memref<10x10x8xf32, #tpu.memory_space<vmem>>, vector<8x8x8xf32>
    %48 = vector.shape_cast %47 : vector<8x8x8xf32> to vector<64x8xf32>
    %c5 = arith.constant 5 : index
    %c0_48 = arith.constant 0 : index
    %c0_49 = arith.constant 0 : index
    %49 = vector.load %arg4[%c5, %c0_48, %c0_49] : memref<9x8x128xf32, #tpu.memory_space<vmem>>, vector<1x8x128xf32>
    %50 = vector.shape_cast %49 : vector<1x8x128xf32> to vector<8x128xf32>
    %cst_50 = arith.constant dense<0.000000e+00> : vector<64x128xf32>
    %51 = tpu.matmul %48, %50, %cst_50 {dimension_numbers = #tpu.dot_dimension_numbers<[1], [0], [0], [1], [0, 0, 1, 1], [], []>} : vector<64x8xf32>, vector<8x128xf32>, vector<64x128xf32> -> vector<64x128xf32>
    %52 = arith.addf %46, %51 : vector<64x128xf32>
    %c2_51 = arith.constant 2 : index
    %c0_52 = arith.constant 0 : index
    %c0_53 = arith.constant 0 : index
    %53 = vector.load %arg6[%c2_51, %c0_52, %c0_53] : memref<10x10x8xf32, #tpu.memory_space<vmem>>, vector<8x8x8xf32>
    %54 = vector.shape_cast %53 : vector<8x8x8xf32> to vector<64x8xf32>
    %c6 = arith.constant 6 : index
    %c0_54 = arith.constant 0 : index
    %c0_55 = arith.constant 0 : index
    %55 = vector.load %arg4[%c6, %c0_54, %c0_55] : memref<9x8x128xf32, #tpu.memory_space<vmem>>, vector<1x8x128xf32>
    %56 = vector.shape_cast %55 : vector<1x8x128xf32> to vector<8x128xf32>
    %cst_56 = arith.constant dense<0.000000e+00> : vector<64x128xf32>
    %57 = tpu.matmul %54, %56, %cst_56 {dimension_numbers = #tpu.dot_dimension_numbers<[1], [0], [0], [1], [0, 0, 1, 1], [], []>} : vector<64x8xf32>, vector<8x128xf32>, vector<64x128xf32> -> vector<64x128xf32>
    %58 = arith.addf %52, %57 : vector<64x128xf32>
    %c2_57 = arith.constant 2 : index
    %c1_58 = arith.constant 1 : index
    %c0_59 = arith.constant 0 : index
    %59 = vector.load %arg6[%c2_57, %c1_58, %c0_59] : memref<10x10x8xf32, #tpu.memory_space<vmem>>, vector<8x8x8xf32>
    %60 = vector.shape_cast %59 : vector<8x8x8xf32> to vector<64x8xf32>
    %c7 = arith.constant 7 : index
    %c0_60 = arith.constant 0 : index
    %c0_61 = arith.constant 0 : index
    %61 = vector.load %arg4[%c7, %c0_60, %c0_61] : memref<9x8x128xf32, #tpu.memory_space<vmem>>, vector<1x8x128xf32>
    %62 = vector.shape_cast %61 : vector<1x8x128xf32> to vector<8x128xf32>
    %cst_62 = arith.constant dense<0.000000e+00> : vector<64x128xf32>
    %63 = tpu.matmul %60, %62, %cst_62 {dimension_numbers = #tpu.dot_dimension_numbers<[1], [0], [0], [1], [0, 0, 1, 1], [], []>} : vector<64x8xf32>, vector<8x128xf32>, vector<64x128xf32> -> vector<64x128xf32>
    %64 = arith.addf %58, %63 : vector<64x128xf32>
    %c2_63 = arith.constant 2 : index
    %c2_64 = arith.constant 2 : index
    %c0_65 = arith.constant 0 : index
    %65 = vector.load %arg6[%c2_63, %c2_64, %c0_65] : memref<10x10x8xf32, #tpu.memory_space<vmem>>, vector<8x8x8xf32>
    %66 = vector.shape_cast %65 : vector<8x8x8xf32> to vector<64x8xf32>
    %c8 = arith.constant 8 : index
    %c0_66 = arith.constant 0 : index
    %c0_67 = arith.constant 0 : index
    %67 = vector.load %arg4[%c8, %c0_66, %c0_67] : memref<9x8x128xf32, #tpu.memory_space<vmem>>, vector<1x8x128xf32>
    %68 = vector.shape_cast %67 : vector<1x8x128xf32> to vector<8x128xf32>
    %cst_68 = arith.constant dense<0.000000e+00> : vector<64x128xf32>
    %69 = tpu.matmul %66, %68, %cst_68 {dimension_numbers = #tpu.dot_dimension_numbers<[1], [0], [0], [1], [0, 0, 1, 1], [], []>} : vector<64x8xf32>, vector<8x128xf32>, vector<64x128xf32> -> vector<64x128xf32>
    %70 = arith.addf %64, %69 : vector<64x128xf32>
    %c0_69 = arith.constant 0 : index
    %c0_70 = arith.constant 0 : index
    %c0_71 = arith.constant 0 : index
    %71 = vector.load %arg5[%c0_69, %c0_70, %c0_71] : memref<1x64x128xf32, #tpu.memory_space<vmem>>, vector<1x64x128xf32>
    %72 = vector.shape_cast %71 : vector<1x64x128xf32> to vector<64x128xf32>
    %73 = vector.shape_cast %70 : vector<64x128xf32> to vector<1x64x128xf32>
    tpu.vector_store %arg5[%c0_69, %c0_70, %c0_71], %73 {strides = array<i32>} : memref<1x64x128xf32, #tpu.memory_space<vmem>>, vector<1x64x128xf32>,
    %74 = vector.extract_strided_slice %70 {offsets = [0, 0], sizes = [64, 8], strides = [1, 1]} : vector<64x128xf32> to vector<64x8xf32>
    %75 = arith.addf %74, %3 : vector<64x8xf32>
    %c0_72 = arith.constant 0 : index
    %c0_73 = arith.constant 0 : index
    %c0_74 = arith.constant 0 : index
    %76 = vector.load %arg5[%c0_72, %c0_73, %c0_74] : memref<1x64x128xf32, #tpu.memory_space<vmem>>, vector<1x64x8xf32>
    %77 = vector.shape_cast %76 : vector<1x64x8xf32> to vector<64x8xf32>
    %78 = vector.shape_cast %75 : vector<64x8xf32> to vector<1x64x8xf32>
    tpu.vector_store %arg5[%c0_72, %c0_73, %c0_74], %78 {strides = array<i32>} : memref<1x64x128xf32, #tpu.memory_space<vmem>>, vector<1x64x8xf32>,
    return
  }
  func.func @transform_0(%arg0: i32) -> (i32, i32, i32) {
    %c0_i32 = arith.constant 0 : i32
    %c0_i32_0 = arith.constant 0 : i32
    %c0_i32_1 = arith.constant 0 : i32
    return %arg0, %c0_i32, %c0_i32_0 : i32, i32, i32
  }
  func.func @transform_1(%arg0: i32) -> (i32, i32) {
    %c0_i32 = arith.constant 0 : i32
    %c0_i32_0 = arith.constant 0 : i32
    %c0_i32_1 = arith.constant 0 : i32
    return %c0_i32, %c0_i32_0 : i32, i32
  }
  func.func @transform_2(%arg0: i32) -> (i32, i32) {
    %c0_i32 = arith.constant 0 : i32
    %c0_i32_0 = arith.constant 0 : i32
    %c0_i32_1 = arith.constant 0 : i32
    return %c0_i32, %c0_i32_0 : i32, i32
  }
  func.func @transform_3(%arg0: i32) -> (i32, i32, i32) {
    %c0_i32 = arith.constant 0 : i32
    %c0_i32_0 = arith.constant 0 : i32
    %c0_i32_1 = arith.constant 0 : i32
    %c0_i32_2 = arith.constant 0 : i32
    return %c0_i32, %c0_i32_0, %c0_i32_1 : i32, i32, i32
  }
  func.func @transform_4(%arg0: i32) -> (i32, i32, i32) {
    %c0_i32 = arith.constant 0 : i32
    %c0_i32_0 = arith.constant 0 : i32
    %c0_i32_1 = arith.constant 0 : i32
    return %arg0, %c0_i32, %c0_i32_0 : i32, i32, i32
  }
}

</mosaic_0001>

<bundles_post_ra>
// kernel: tile.13
= control target key start
LH: loop header
LB: loop body
LE: loop exit
PB: predicated region body
PF: predicated region fallthrough
CT: control target
= control target key end

     0   :  { %s22_s0 = inlined_call_operand.vmem [shape: f32[4], index: 0, kind: input, shape index: {}]   ;;  %s23_s1 = inlined_call_operand.vmem [shape: f32[4,4], index: 1, kind: output, shape index: {}]  }
   0x1   :  { %v4_v0 = vld [vmem:[%s22_s0] ss:$0 sm:$0xff] }
   0x2   :  { %5 = vst [vmem:[%s23_s1] sm:$0xf] %v4_v0 }

// kernel: tile.14
= control target key start
LH: loop header
LB: loop body
LE: loop exit
PB: predicated region body
PF: predicated region fallthrough
CT: control target
= control target key end

     0   :  { %vm8_vm0 = vcmask 31744   ;;  %s40_s8 = smov 4   ;;  %s41_s9 = smov 8   ;;  %vm14_vm1 = vcmask 130144   ;;  %vm20_vm2 = vcmask 97344   ;;  %vm26_vm3 = vcmask 64544   ;;  %s58_s0 = inlined_call_operand.vmem [shape: f32[4,4], index: 0, kind: input, shape index: {}]   ;;  %s59_s1 = inlined_call_operand.vmem [shape: f32[1,1,16], index: 1, kind: output, shape index: {}]  }
   0x1   :  { %v5_v0 = vld [vmem:[%s58_s0] sm:$0xf]  ;;  %s39_s0 = smov 12  }
   0x2   :  { %6 = vst [vmem:[#allocation1] sm:$0xf] %v5_v0 }
   0x9   :  { %v11_v1 = vld [vmem:[#allocation1 + $0x3] sm:$0x1]   ;;  %v23_v2 = vld [vmem:[#allocation1 + $0x1] sm:$0x1]   ;;  %v7_v3 = vld [vmem:[#allocation1] sm:$0x1]  }
   0xa   :  { %12 = vrot.lane.b32.xlu0 %v11_v1, %s39_s0  ;;  %24 = vrot.lane.b32.xlu1 %v23_v2, %s40_s8  ;;  %v17_v4 = vld [vmem:[#allocation1 + $0x2] sm:$0x1]   ;;  %9 = vst.msk [vmem:[#allocation0] sm:$0x1] %vm8_vm0, %v7_v3  }
   0xe   :  { %18 = vrot.lane.b32.xlu0 %v17_v4, %s41_s9 }
  0x7c   :  { %v13_v5 = vpop.permute.xlu0 %12   ;;  %v25_v6 = vpop.permute.xlu1 %24  }
  0x7d   :  { %15 = vst.msk [vmem:[#allocation0] sm:$0x1] %vm14_vm1, %v13_v5  }
  0x80   :  { %v19_v7 = vpop.permute.xlu0 %18  }
  0x81   :  { %21 = vst.msk [vmem:[#allocation0] sm:$0x1] %vm20_vm2, %v19_v7  }
  0x82   :  { %27 = vst.msk [vmem:[#allocation0] sm:$0x1] %vm26_vm3, %v25_v6  }
  0x89   :  { %v32_v8 = vld [vmem:[#allocation0] sm:$0x1] }
  0x8a   :  { %35 = vst [vmem:[%s59_s1] sm:$0x1] %v32_v8 }

// kernel: preact_block_forward.3
= control target key start
LH: loop header
LB: loop body
LE: loop exit
PB: predicated region body
PF: predicated region fallthrough
CT: control target
= control target key end

     0   :  { %s385_s6 = smov 0   ;;  %s514_s0 = inlined_call_operand.vmem [shape: f32[512,4], index: 0, kind: input, shape index: {}]   ;;  %s515_s1 = inlined_call_operand.vmem [shape: f32[2,4], index: 1, kind: output, shape index: {}]  }
   0x1 LB: > { %s348_s7 = sadd.s32 4294967295, %s372_s6   ;;  %p351_p0 = scmp.ge.s32.totalorder %s372_s6, 1  ;;  %s372_s6 = sphi %s385_s6, %s11_s6  }
   0x2   : > { %p83_p1 = scmp.lt.s32.totalorder %s372_s6, 3 }
   0x4   : > { %p84_p2 = pnand %p351_p0, %p83_p1 }
   0x5   : > { %s352_s8 = sshll.u32 (!%p84_p2), %s348_s7, 5  ;;  %p354_p4 = scmp.ne.s32.totalorder (!%p84_p2), %s348_s7, 0 }
   0x6   : > { %87 = sbr.rel (%p84_p2) target bundleno = 102 (0x66), region = 24  ;;  %p99_p3 = scmp.lt.s32.totalorder (!%p84_p2), %s352_s8, 63 }
   0xb   : > { %s517_s8 = smov (!%p99_p3, %s352_s8), 63  ;;  %107 = sbr.rel (%p354_p4) target bundleno = 18 (0x12), region = 28 }
   0xc   : > { %s353_s9 = sshll.u32 %s517_s8, 3 }
   0xd   : > { %s396_s12 = scalar_lea.vmem %s514_s0, %s353_s9 }
  0x10   : > { %vm108_vm0 = vcmask 25600   ;;  %v374_v0 = vmov 0.0  }
  0x11   : > { %109 = vst.msk [vmem:[%s515_s1] sm:$0x3] %vm108_vm0, %v374_v0 }
  0x12 PF: > { %v110_v1 = vld [vmem:[%s396_s12] sm:$0xff]  ;;  %v111_v2 = vld [vmem:[%s396_s12 + $0x8] sm:$0xff]  ;;  %v112_v3 = vld [vmem:[%s396_s12 + $0x10] sm:$0xff]  ;;  %vm143_vm1 = vcmask 31744   ;;  %vm214_vm2 = vcmask 24576  }
  0x13   : > { %v144_v4 = vsel %vm143_vm1, %v110_v1, 0.0  ;;  %v145_v5 = vsel %vm143_vm1, %v111_v2, 0.0  ;;  %v147_v6 = vsel %vm143_vm1, %v112_v3, 0.0  ;;  %v113_v7 = vld [vmem:[%s396_s12 + $0x18] sm:$0xff]  ;;  %v114_v10 = vld [vmem:[%s396_s12 + $0x20] sm:$0xff]  ;;  %v115_v13 = vld [vmem:[%s396_s12 + $0x28] sm:$0xff]  ;;  %v217_v28 = vmul.f32 %v110_v1, %v110_v1 }
  0x14   : > { %v146_v8 = vadd.f32 %v145_v5, %v144_v4  ;;  %v149_v9 = vsel %vm143_vm1, %v113_v7, 0.0  ;;  %v151_v12 = vsel %vm143_vm1, %v114_v10, 0.0  ;;  %v153_v15 = vsel %vm143_vm1, %v115_v13, 0.0  ;;  %v116_v16 = vld [vmem:[%s396_s12 + $0x30] sm:$0xff]  ;;  %v117_v19 = vld [vmem:[%s396_s12 + $0x38] sm:$0xff]  ;;  %v118_v22 = vld [vmem:[%s396_s12 + $0x40] sm:$0xff] }
  0x15   : > { %v155_v18 = vsel %vm143_vm1, %v116_v16, 0.0  ;;  %v157_v21 = vsel %vm143_vm1, %v117_v19, 0.0  ;;  %v159_v24 = vsel %vm143_vm1, %v118_v22, 0.0  ;;  %v119_v25 = vld [vmem:[%s396_s12 + $0x48] sm:$0xff]  ;;  %v218_v29 = vmul.f32 %v111_v2, %v111_v2  ;;  %v120_v31 = vld [vmem:[%s396_s12 + $0x50] sm:$0xff]  ;;  %v121_v33 = vld [vmem:[%s396_s12 + $0x58] sm:$0xff] }
  0x16   : > { %v148_v11 = vadd.f32 %v147_v6, %v146_v8  ;;  %v161_v27 = vsel %vm143_vm1, %v119_v25, 0.0  ;;  %v219_v30 = vmul.f32 %v112_v3, %v112_v3  ;;  %v163_v34 = vsel %vm143_vm1, %v120_v31, 0.0  ;;  %v122_v42 = vld [vmem:[%s396_s12 + $0x60] sm:$0xff]  ;;  %v123_v48 = vld [vmem:[%s396_s12 + $0x68] sm:$0xff]  ;;  %v124_v54 = vld [vmem:[%s396_s12 + $0x70] sm:$0xff] }
  0x17   : > { %v220_v35 = vmul.f32 %v113_v7, %v113_v7  ;;  %v165_v37 = vsel %vm143_vm1, %v121_v33, 0.0  ;;  %v221_v38 = vmul.f32 %v114_v10, %v114_v10  ;;  %v249_v39 = vsel %vm143_vm1, %v217_v28, 0.0  ;;  %v125_v60 = vld [vmem:[%s396_s12 + $0x78] sm:$0xff]  ;;  %v126_v2 = vld [vmem:[%s396_s12 + $0x80] sm:$0xff]  ;;  %v127_v8 = vld [vmem:[%s396_s12 + $0x88] sm:$0xff] }
  0x18   : > { %v150_v14 = vadd.f32 %v149_v9, %v148_v11  ;;  %v250_v40 = vsel %vm143_vm1, %v218_v29, 0.0  ;;  %v252_v41 = vsel %vm143_vm1, %v219_v30, 0.0  ;;  %v167_v45 = vsel %vm143_vm1, %v122_v42, 0.0 }
  0x19   : > { %v251_v44 = vadd.f32 %v250_v40, %v249_v39  ;;  %v222_v46 = vmul.f32 %v115_v13, %v115_v13  ;;  %v254_v47 = vsel %vm143_vm1, %v220_v35, 0.0  ;;  %v169_v51 = vsel %vm143_vm1, %v123_v48, 0.0 }
  0x1a   : > { %v152_v17 = vadd.f32 %v151_v12, %v150_v14  ;;  %v223_v52 = vmul.f32 %v116_v16, %v116_v16  ;;  %v256_v53 = vsel %vm143_vm1, %v221_v38, 0.0  ;;  %v171_v57 = vsel %vm143_vm1, %v124_v54, 0.0  ;;  %v128_v14 = vld [vmem:[%s396_s12 + $0x90] sm:$0xff] }
  0x1b   : > { %v253_v50 = vadd.f32 %v252_v41, %v251_v44  ;;  %v224_v58 = vmul.f32 %v117_v19, %v117_v19  ;;  %v258_v59 = vsel %vm143_vm1, %v222_v46, 0.0  ;;  %v173_v63 = vsel %vm143_vm1, %v125_v60, 0.0  ;;  %v132_v38 = vld [vmem:[%s396_s12 + $0xb0] sm:$0xff]  ;;  %v133_v44 = vld [vmem:[%s396_s12 + $0xb8] sm:$0xff] }
  0x1c   : > { %v154_v20 = vadd.f32 %v153_v15, %v152_v17  ;;  %v225_v0 = vmul.f32 %v118_v22, %v118_v22  ;;  %v260_v1 = vsel %vm143_vm1, %v223_v52, 0.0  ;;  %v175_v5 = vsel %vm143_vm1, %v126_v2, 0.0 }
  0x1d   : > { %v255_v56 = vadd.f32 %v254_v47, %v253_v50  ;;  %v226_v6 = vmul.f32 %v119_v25, %v119_v25  ;;  %v262_v7 = vsel %vm143_vm1, %v224_v58, 0.0  ;;  %v177_v11 = vsel %vm143_vm1, %v127_v8, 0.0  ;;  %v134_v50 = vld [vmem:[%s396_s12 + $0xc0] sm:$0xff] }
  0x1e   : > { %v156_v23 = vadd.f32 %v155_v18, %v154_v20  ;;  %v227_v12 = vmul.f32 %v120_v31, %v120_v31  ;;  %v264_v13 = vsel %vm143_vm1, %v225_v0, 0.0  ;;  %v179_v17 = vsel %vm143_vm1, %v128_v14, 0.0  ;;  %v129_v20 = vld [vmem:[%s396_s12 + $0x98] sm:$0xff] }
  0x1f   : > { %v257_v62 = vadd.f32 %v256_v53, %v255_v56  ;;  %v228_v18 = vmul.f32 %v121_v33, %v121_v33  ;;  %v266_v19 = vsel %vm143_vm1, %v226_v6, 0.0  ;;  %v230_v30 = vmul.f32 %v123_v48, %v123_v48  ;;  %v135_v56 = vld [vmem:[%s396_s12 + $0xc8] sm:$0xff] }
  0x20   : > { %v158_v26 = vadd.f32 %v157_v21, %v156_v23  ;;  %v181_v23 = vsel %vm143_vm1, %v129_v20, 0.0  ;;  %v268_v25 = vsel %vm143_vm1, %v227_v12, 0.0  ;;  %v187_v41 = vsel %vm143_vm1, %v132_v38, 0.0 }
  0x21   : > { %v259_v4 = vadd.f32 %v258_v59, %v257_v62  ;;  %v270_v31 = vsel %vm143_vm1, %v228_v18, 0.0  ;;  %v189_v47 = vsel %vm143_vm1, %v133_v44, 0.0  ;;  %v233_v48 = vmul.f32 %v126_v2, %v126_v2  ;;  %v136_v62 = vld [vmem:[%s396_s12 + $0xd0] sm:$0xff] }
  0x22   : > { %v160_v32 = vadd.f32 %v159_v24, %v158_v26  ;;  %v229_v24 = vmul.f32 %v122_v42, %v122_v42  ;;  %v130_v26 = vld [vmem:[%s396_s12 + $0xa0] sm:$0xff]  ;;  %v232_v42 = vmul.f32 %v125_v60, %v125_v60  ;;  %v191_v53 = vsel %vm143_vm1, %v134_v50, 0.0 }
  0x23   : > { %v261_v10 = vadd.f32 %v260_v1, %v259_v4  ;;  %v183_v29 = vsel %vm143_vm1, %v130_v26, 0.0  ;;  %v193_v59 = vsel %vm143_vm1, %v135_v56, 0.0  ;;  %v235_v60 = vmul.f32 %v128_v14, %v128_v14  ;;  %v137_v4 = vld [vmem:[%s396_s12 + $0xd8] sm:$0xff] }
  0x24   : > { %v162_v36 = vadd.f32 %v161_v27, %v160_v32  ;;  %v131_v32 = vld [vmem:[%s396_s12 + $0xa8] sm:$0xff]  ;;  %v195_v1 = vsel %vm143_vm1, %v136_v62, 0.0  ;;  %v236_v2 = vmul.f32 %v129_v20, %v129_v20  ;;  %v239_v20 = vmul.f32 %v132_v38, %v132_v38 }
  0x25   : > { %v263_v16 = vadd.f32 %v262_v7, %v261_v10  ;;  %v185_v35 = vsel %vm143_vm1, %v131_v32, 0.0  ;;  %v197_v7 = vsel %vm143_vm1, %v137_v4, 0.0  ;;  %v138_v10 = vld [vmem:[%s396_s12 + $0xe0] sm:$0xff]  ;;  %v238_v14 = vmul.f32 %v131_v32, %v131_v32 }
  0x26   : > { %v164_v43 = vadd.f32 %v163_v34, %v162_v36  ;;  %v231_v36 = vmul.f32 %v124_v54, %v124_v54  ;;  %v234_v54 = vmul.f32 %v127_v8, %v127_v8  ;;  %v237_v8 = vmul.f32 %v130_v26, %v130_v26 }
  0x27   : > { %v265_v22 = vadd.f32 %v264_v13, %v263_v16  ;;  %v199_v13 = vsel %vm143_vm1, %v138_v10, 0.0  ;;  %v139_v16 = vld [vmem:[%s396_s12 + $0xe8] sm:$0xff]  ;;  %v240_v26 = vmul.f32 %v133_v44, %v133_v44  ;;  %v241_v32 = vmul.f32 %v134_v50, %v134_v50 }
  0x28   : > { %v166_v49 = vadd.f32 %v165_v37, %v164_v43  ;;  %v272_v37 = vsel %vm143_vm1, %v229_v24, 0.0  ;;  %v274_v43 = vsel %vm143_vm1, %v230_v30, 0.0  ;;  %v244_v44 = vmul.f32 %v137_v4, %v137_v4 }
  0x29   : > { %v267_v28 = vadd.f32 %v266_v19, %v265_v22  ;;  %v201_v19 = vsel %vm143_vm1, %v139_v16, 0.0  ;;  %v140_v22 = vld [vmem:[%s396_s12 + $0xf0] sm:$0xff] }
  0x2a   : > { %v168_v55 = vadd.f32 %v167_v45, %v166_v49  ;;  %v276_v49 = vsel %vm143_vm1, %v231_v36, 0.0  ;;  %v242_v36 = vmul.f32 %v135_v56, %v135_v56  ;;  %v247_v56 = vmul.f32 %v140_v22, %v140_v22 }
  0x2b   : > { %v269_v34 = vadd.f32 %v268_v25, %v267_v28  ;;  %v203_v25 = vsel %vm143_vm1, %v140_v22, 0.0  ;;  %v141_v28 = vld [vmem:[%s396_s12 + $0xf8] sm:$0xff] }
  0x2c   : > { %v170_v61 = vadd.f32 %v169_v51, %v168_v55  ;;  %v278_v55 = vsel %vm143_vm1, %v232_v42, 0.0 }
  0x2d   : > { %v271_v40 = vadd.f32 %v270_v31, %v269_v34  ;;  %v205_v31 = vsel %vm143_vm1, %v141_v28, 0.0 }
  0x2e   : > { %v172_v3 = vadd.f32 %v171_v57, %v170_v61  ;;  %v280_v61 = vsel %vm143_vm1, %v233_v48, 0.0  ;;  %v245_v48 = vmul.f32 %v138_v10, %v138_v10 }
  0x2f   : > { %v273_v46 = vadd.f32 %v272_v37, %v271_v40  ;;  %v294_v37 = vsel %vm143_vm1, %v240_v26, 0.0  ;;  %v243_v40 = vmul.f32 %v136_v62, %v136_v62 }
  0x30   : > { %v174_v9 = vadd.f32 %v173_v63, %v172_v3  ;;  %v282_v3 = vsel %vm143_vm1, %v234_v54, 0.0 }
  0x31   : > { %v275_v52 = vadd.f32 %v274_v43, %v273_v46 }
  0x32   : > { %v176_v15 = vadd.f32 %v175_v5, %v174_v9  ;;  %v284_v9 = vsel %vm143_vm1, %v235_v60, 0.0  ;;  %v142_v60 = vld [vmem:[%s515_s1] sm:$0x1] }
  0x33   : > { %v277_v58 = vadd.f32 %v276_v49, %v275_v52  ;;  %v300_v49 = vsel %vm143_vm1, %v243_v40, 0.0  ;;  %v246_v52 = vmul.f32 %v139_v16, %v139_v16 }
  0x34   : > { %v178_v21 = vadd.f32 %v177_v11, %v176_v15  ;;  %v286_v15 = vsel %vm143_vm1, %v236_v2, 0.0 }
  0x35   : > { %v279_v0 = vadd.f32 %v278_v55, %v277_v58  ;;  %v306_v62 = vsel %vm143_vm1, %v246_v52, 0.0 }
  0x36   : > { %v180_v27 = vadd.f32 %v179_v17, %v178_v21  ;;  %v288_v21 = vsel %vm143_vm1, %v237_v8, 0.0 }
  0x37   : > { %v281_v6 = vadd.f32 %v280_v61, %v279_v0  ;;  %v248_v61 = vmul.f32 %v141_v28, %v141_v28 }
  0x38   : > { %v182_v33 = vadd.f32 %v181_v23, %v180_v27  ;;  %v290_v27 = vsel %vm143_vm1, %v238_v14, 0.0 }
  0x39   : > { %v283_v12 = vadd.f32 %v282_v3, %v281_v6  ;;  %v310_v4 = vsel %vm143_vm1, %v248_v61, 0.0 }
  0x3a   : > { %v184_v39 = vadd.f32 %v183_v29, %v182_v33  ;;  %v292_v33 = vsel %vm143_vm1, %v239_v20, 0.0 }
  0x3b   : > { %v285_v18 = vadd.f32 %v284_v9, %v283_v12  ;;  %v216_v12 = vld [vmem:[%s515_s1 + $0x1] sm:$0x1] }
  0x3c   : > { %v186_v45 = vadd.f32 %v185_v35, %v184_v39 }
  0x3d   : > { %v287_v24 = vadd.f32 %v286_v15, %v285_v18 }
  0x3e   : > { %v188_v51 = vadd.f32 %v187_v41, %v186_v45  ;;  %v296_v41 = vsel %vm143_vm1, %v241_v32, 0.0  ;;  %v298_v45 = vsel %vm143_vm1, %v242_v36, 0.0 }
  0x3f   : > { %v289_v30 = vadd.f32 %v288_v21, %v287_v24 }
  0x40   : > { %v190_v57 = vadd.f32 %v189_v47, %v188_v51 }
  0x41   : > { %v291_v35 = vadd.f32 %v290_v27, %v289_v30 }
  0x42   : > { %v192_v63 = vadd.f32 %v191_v53, %v190_v57  ;;  %v302_v53 = vsel %vm143_vm1, %v244_v44, 0.0  ;;  %v304_v57 = vsel %vm143_vm1, %v245_v48, 0.0 }
  0x43   : > { %v293_v39 = vadd.f32 %v292_v33, %v291_v35 }
  0x44   : > { %v194_v5 = vadd.f32 %v193_v59, %v192_v63 }
  0x45   : > { %v295_v43 = vadd.f32 %v294_v37, %v293_v39 }
  0x46   : > { %v196_v11 = vadd.f32 %v195_v1, %v194_v5  ;;  %v308_v1 = vsel %vm143_vm1, %v247_v56, 0.0 }
  0x47   : > { %v297_v47 = vadd.f32 %v296_v41, %v295_v43 }
  0x48   : > { %v198_v17 = vadd.f32 %v197_v7, %v196_v11 }
  0x49   : > { %v299_v51 = vadd.f32 %v298_v45, %v297_v47 }
  0x4a   : > { %v200_v23 = vadd.f32 %v199_v13, %v198_v17 }
  0x4b   : > { %v301_v55 = vadd.f32 %v300_v49, %v299_v51 }
  0x4c   : > { %v202_v29 = vadd.f32 %v201_v19, %v200_v23 }
  0x4d   : > { %v303_v59 = vadd.f32 %v302_v53, %v301_v55 }
  0x4e   : > { %v204_v34 = vadd.f32 %v203_v25, %v202_v29 }
  0x4f   : > { %v305_v0 = vadd.f32 %v304_v57, %v303_v59 }
  0x50   : > { %v206_v38 = vadd.f32 %v205_v31, %v204_v34 }
  0x51   : > { %v307_v3 = vadd.f32 %v306_v62, %v305_v0 }
  0x52   : > { %v207_v42 = vrot.slane %v206_v38, 4 }
  0x53   : > { %v309_v5 = vadd.f32 %v308_v1, %v307_v3 }
  0x54   : > { %v208_v46 = vadd.f32 %v207_v42, %v206_v38 }
  0x55   : > { %v311_v6 = vadd.f32 %v310_v4, %v309_v5 }
  0x56   : > { %v209_v50 = vrot.slane %v208_v46, 2 }
  0x57   : > { %v312_v7 = vrot.slane %v311_v6, 4 }
  0x58   : > { %v210_v54 = vadd.f32 %v209_v50, %v208_v46 }
  0x59   : > { %v313_v8 = vadd.f32 %v312_v7, %v311_v6 }
  0x5a   : > { %v211_v58 = vrot.slane %v210_v54, 1 }
  0x5b   : > { %v314_v9 = vrot.slane %v313_v8, 2 }
  0x5c   : > { %v212_v63 = vadd.f32 %v211_v58, %v210_v54 }
  0x5d   : > { %v315_v10 = vadd.f32 %v314_v9, %v313_v8 }
  0x5e   : > { %v213_v2 = vadd.f32 %v212_v63, %v142_v60 }
  0x5f   : > { %v316_v11 = vrot.slane %v315_v10, 1 }
  0x60   : > { %215 = vst.msk [vmem:[%s515_s1] sm:$0x1] %vm214_vm2, %v213_v2 }
  0x61   : > { %v317_v13 = vadd.f32 %v316_v11, %v315_v10 }
  0x63   : > { %v318_v14 = vadd.f32 %v317_v13, %v216_v12 }
  0x65   : > { %319 = vst.msk [vmem:[%s515_s1 + $0x1] sm:$0x1] %vm214_vm2, %v318_v14 }
  0x66 PF: > { %s11_s6 = sadd.s32 1, %s372_s6  }
  0x67   : > { %p8_p5 = scmp.ge.s32.totalorder %s11_s6, 4  }
  0x69   :  { %10 = sbr.rel (!%p8_p5) target bundleno = 1 (0x1), region = 54 }

// kernel: preact_block_forward.4
= control target key start
LH: loop header
LB: loop body
LE: loop exit
PB: predicated region body
PF: predicated region fallthrough
CT: control target
= control target key end

     0   :  { %s1253_s21 = smov 0   ;;  %s1508_s0 = inlined_call_operand.vmem [shape: f32[2,9,9,16], index: 0, kind: input, shape index: {}]   ;;  %s1509_s1 = inlined_call_operand.vmem [shape: f32[9,9,16], index: 1, kind: input, shape index: {}]   ;;  %s1510_s2 = inlined_call_operand.vmem [shape: f32[1,1,16], index: 2, kind: input, shape index: {}]   ;;  %s1511_s3 = inlined_call_operand.vmem [shape: f32[1,1,16], index: 3, kind: input, shape index: {}]   ;;  %s1512_s4 = inlined_call_operand.vmem [shape: f32[4,16,128], index: 4, kind: input, shape index: {}]   ;;  %s1513_s5 = inlined_call_operand.vmem [shape: f32[2,64,128], index: 5, kind: output, shape index: {0}]   ;;  %s1514_s6 = inlined_call_operand.vmem [shape: f32[2,2,128], index: 6, kind: output, shape index: {1}]  }
   0x1 LB: > { %s1045_s22 = sadd.s32 4294967295, %s1216_s21   ;;  %p1049_p0 = scmp.ge.s32.totalorder %s1216_s21, 1  ;;  %s1216_s21 = sphi %s1253_s21, %s17_s21  }
   0x2   : > { %p215_p1 = scmp.lt.s32.totalorder %s1216_s21, 3 }
   0x4   : > { %p216_p2 = pnand %p1049_p0, %p215_p1 }
   0x5   : > { %p249_p3 = scmp.lt.s32.totalorder (!%p216_p2), %s1045_s22, 1 }
   0x6   : > { %219 = sbr.rel (%p216_p2) target bundleno = 277 (0x115), region = 40 }
   0xb   : > { %v1057_v0 = vld [vmem:[%s1512_s4 + $0x18] sm:$0xff]  ;;  %v386_v1 = vld [vmem:[%s1512_s4 + $0x8] sm:$0xff]  ;;  %v1056_v2 = vld [vmem:[%s1512_s4 + $0x10] sm:$0xff]  ;;  %s1516_s22 = smov (!%p249_p3, %s1045_s22), 1  ;;  %vm403_vm0 = vcmask 1046528   ;;  %vm431_vm1 = vcmask 130048  }
   0xc   : > { %1137 = vmatprep.subr.mxu0 %v1057_v0  ;;  %1153 = vmatprep.subr.mxu1 %v386_v1  ;;  %v385_v3 = vld [vmem:[%s1512_s4] sm:$0xff]  ;;  %v1278_v4 = vld [vmem:[%s1512_s4 + $0x28] sm:$0xff]  ;;  %v1283_v5 = vld [vmem:[%s1512_s4 + $0x38] sm:$0xff]  ;;  %s1201_s11 = smul.u32 144, %s1516_s22  ;;  %s1096_s15 = sshll.u32 %s1516_s22, 6 }
   0xd   : > { %1138 = vmatpush3.msra.mxu0 %v1057_v0  ;;  %1154 = vmatpush3.msra.mxu1 %v386_v1  ;;  %v1289_v6 = vld [vmem:[%s1510_s2] ss:$0 sm:$0xff]  ;;  %v350_v27 = vld [vmem:[%s1509_s1 + $0x8] sm:$0x1]  ;;  %v351_v29 = vld [vmem:[%s1509_s1 + $0x10] sm:$0xff]  ;;  %s1491_s19 = scalar_lea.vmem %s1513_s5, %s1096_s15  ;;  %s1053_s20 = sshll.u32 %s1516_s22, 1 }
   0xe   : > { %1139 = vmatprep.subr.mxu0 %v1056_v2  ;;  %1155 = vmatprep.subr.mxu1 %v385_v3  ;;  %s1296_s16 = scalar_lea.vmem %s1508_s0, %s1201_s11  ;;  %v1301_v7 = vld [vmem:[%s1511_s3] ss:$0 sm:$0xff]  ;;  %v352_v30 = vld [vmem:[%s1509_s1 + $0x18] sm:$0x1]  ;;  %v354_v38 = vld [vmem:[%s1509_s1 + $0x28] sm:$0x1]  ;;  %s262_s25 = scalar_lea.vmem %s1514_s6, %s1053_s20 }
   0xf   : > { %1140 = vmatpush3.msra.mxu0 %v1056_v2  ;;  %1156 = vmatpush3.msra.mxu1 %v385_v3  ;;  %v263_v8 = vld [vmem:[%s1296_s16] sm:$0xff]  ;;  %v264_v9 = vld [vmem:[%s1296_s16 + $0x8] sm:$0x1]  ;;  %v265_v10 = vld [vmem:[%s1296_s16 + $0x10] sm:$0xff] }
  0x10   : > { %1169 = vmatprep.subr.mxu0 %v1278_v4  ;;  %1185 = vmatprep.subr.mxu1 %v1283_v5  ;;  %v288_v11 = vmul.f32 %v1289_v6, %v263_v8  ;;  %v289_v12 = vmul.f32 %v1289_v6, %v264_v9  ;;  %v266_v13 = vld [vmem:[%s1296_s16 + $0x18] sm:$0x1]  ;;  %v290_v14 = vmul.f32 %v1289_v6, %v265_v10  ;;  %v267_v15 = vld [vmem:[%s1296_s16 + $0x20] sm:$0xff]  ;;  %v268_v16 = vld [vmem:[%s1296_s16 + $0x28] sm:$0x1] }
  0x11   : > { %v291_v17 = vmul.f32 %v1289_v6, %v266_v13  ;;  %v292_v18 = vmul.f32 %v1289_v6, %v267_v15  ;;  %v293_v19 = vmul.f32 %v1289_v6, %v268_v16  ;;  %v269_v20 = vld [vmem:[%s1296_s16 + $0x30] sm:$0xff]  ;;  %v270_v21 = vld [vmem:[%s1296_s16 + $0x38] sm:$0x1]  ;;  %v349_v24 = vld [vmem:[%s1509_s1] sm:$0xff] }
  0x12   : > { %v313_v22 = vadd.f32 %v1301_v7, %v288_v11  ;;  %v314_v23 = vadd.f32 %v1301_v7, %v289_v12  ;;  %v315_v25 = vadd.f32 %v1301_v7, %v290_v14  ;;  %v294_v26 = vmul.f32 %v1289_v6, %v269_v20  ;;  %v353_v37 = vld [vmem:[%s1509_s1 + $0x20] sm:$0xff]  ;;  %v355_v44 = vld [vmem:[%s1509_s1 + $0x30] sm:$0xff]  ;;  %v356_v49 = vld [vmem:[%s1509_s1 + $0x38] sm:$0x1] }
  0x13   : > { %v316_v28 = vadd.f32 %v1301_v7, %v291_v17  ;;  %v317_v31 = vadd.f32 %v1301_v7, %v292_v18  ;;  %v318_v32 = vadd.f32 %v1301_v7, %v293_v19  ;;  %v295_v33 = vmul.f32 %v1289_v6, %v270_v21  ;;  %v271_v54 = vld [vmem:[%s1296_s16 + $0x40] sm:$0xff]  ;;  %v272_v55 = vld [vmem:[%s1296_s16 + $0x48] sm:$0x1]  ;;  %v273_v60 = vld [vmem:[%s1296_s16 + $0x50] sm:$0xff] }
  0x14   : > { %v331_v34 = vmax.f32 %v313_v22, 0.0  ;;  %v332_v35 = vmax.f32 %v314_v23, 0.0  ;;  %v333_v36 = vmax.f32 %v315_v25, 0.0  ;;  %v319_v39 = vadd.f32 %v1301_v7, %v294_v26  ;;  %v1084_v61 = vld [vmem:[%s1512_s4 + $0x30] sm:$0xff]  ;;  %v274_v2 = vld [vmem:[%s1296_s16 + $0x58] sm:$0x1] }
  0x15   : > { %v334_v40 = vmax.f32 %v316_v28, 0.0  ;;  %v335_v41 = vmax.f32 %v317_v31, 0.0  ;;  %v336_v42 = vmax.f32 %v318_v32, 0.0  ;;  %v320_v43 = vadd.f32 %v1301_v7, %v295_v33  ;;  %v275_v11 = vld [vmem:[%s1296_s16 + $0x60] sm:$0xff]  ;;  %v276_v16 = vld [vmem:[%s1296_s16 + $0x68] sm:$0x1] }
  0x16   : > { %v367_v45 = vmul.f32 %v349_v24, %v331_v34  ;;  %v368_v46 = vmul.f32 %v350_v27, %v332_v35  ;;  %v1348_v47 = vmul.f32 %v351_v29, %v333_v36  ;;  %v337_v48 = vmax.f32 %v319_v39, 0.0  ;;  %v1074_v14 = vld [vmem:[%s1512_s4 + $0x20] sm:$0xff]  ;;  %v277_v20 = vld [vmem:[%s1296_s16 + $0x70] sm:$0xff]  ;;  %v278_v21 = vld [vmem:[%s1296_s16 + $0x78] sm:$0x1] }
  0x17   : > { %v370_v50 = vmul.f32 %v352_v30, %v334_v40  ;;  %v1353_v51 = vmul.f32 %v353_v37, %v335_v41  ;;  %v372_v52 = vmul.f32 %v354_v38, %v336_v42  ;;  %v338_v53 = vmax.f32 %v320_v43, 0.0  ;;  %v357_v23 = vld [vmem:[%s1509_s1 + $0x40] sm:$0xff]  ;;  %v358_v24 = vld [vmem:[%s1509_s1 + $0x48] sm:$0x1]  ;;  %v359_v29 = vld [vmem:[%s1509_s1 + $0x50] sm:$0xff] }
  0x18   : > { %v404_v56 = vrot.slane %v367_v45, 1  ;;  %v405_v57 = vrot.slane %v368_v46, 1  ;;  %1157 = vmatprep.mubr.msk.f32.mxu1 %vm431_vm1, %v367_v45  ;;  %v407_v58 = vrot.slane %v1348_v47, 1  ;;  %v1359_v59 = vmul.f32 %v355_v44, %v337_v48  ;;  %v360_v32 = vld [vmem:[%s1509_s1 + $0x58] sm:$0x1]  ;;  %v361_v40 = vld [vmem:[%s1509_s1 + $0x60] sm:$0xff] }
  0x19   : > { %v408_v62 = vrot.slane %v370_v50, 1  ;;  %1158 = vmatmul.mubr.msk.f32.vlgmr.msra.gmra.mxu1 %vm431_vm1, %v1348_v47  ;;  %v410_v63 = vrot.slane %v1353_v51, 1  ;;  %v411_v0 = vrot.slane %v372_v52, 1  ;;  %v374_v1 = vmul.f32 %v356_v49, %v338_v53  ;;  %v362_v43 = vld [vmem:[%s1509_s1 + $0x68] sm:$0x1]  ;;  %v279_v48 = vld [vmem:[%s1296_s16 + $0x80] sm:$0xff] }
  0x1a   : > { %v406_v3 = vsel %vm403_vm0, %v404_v56, %v405_v57  ;;  %1186 = vmatpush3.msra.mxu1 %v1283_v5  ;;  %1160 = vmatprep.mubr.msk.f32.mxu1 %vm431_vm1, %v1353_v51  ;;  %v413_v8 = vrot.slane %v1359_v59, 1  ;;  %v296_v9 = vmul.f32 %v1289_v6, %v271_v54  ;;  %v297_v10 = vmul.f32 %v1289_v6, %v272_v55  ;;  %v364_v46 = vld [vmem:[%s1509_s1 + $0x78] sm:$0x1]  ;;  %v363_v54 = vld [vmem:[%s1509_s1 + $0x70] sm:$0xff]  ;;  %v280_v55 = vld [vmem:[%s1296_s16 + $0x88] sm:$0x1] }
  0x1b   : > { %1141 = vmatprep.mubr.msk.f32.mxu0 %vm431_vm1, %v406_v3  ;;  %v1379_v12 = vsel %vm403_vm0, %v407_v58, %v408_v62  ;;  %v1382_v13 = vsel %vm403_vm0, %v410_v63, %v411_v0  ;;  %v414_v5 = vrot.slane %v374_v1, 1  ;;  %v298_v15 = vmul.f32 %v1289_v6, %v273_v60  ;;  %1187 = vmatprep.subr.mxu1 %v1084_v61 }
  0x1c   : > { %1142 = vmatmul.mubr.msk.f32.vlgmr.msra.gmra.mxu0 %vm431_vm1, %v1379_v12  ;;  %v321_v17 = vadd.f32 %v1301_v7, %v296_v9  ;;  %v322_v18 = vadd.f32 %v1301_v7, %v297_v10  ;;  %v299_v19 = vmul.f32 %v1289_v6, %v274_v2  ;;  %1188 = vmatpush3.msra.mxu1 %v1084_v61 }
  0x1d   : > { %1170 = vmatpush3.msra.mxu0 %v1278_v4  ;;  %1144 = vmatprep.mubr.msk.f32.mxu0 %vm431_vm1, %v1382_v13  ;;  %v1400_v22 = vsel %vm403_vm0, %v413_v8, %v414_v5  ;;  %v323_v25 = vadd.f32 %v1301_v7, %v298_v15  ;;  %v300_v26 = vmul.f32 %v1289_v6, %v275_v11 }
  0x1e   : > { %1161 = vmatmul.mubr.msk.f32.gmra.mxu1 %vm431_vm1, %v1359_v59  ;;  %v339_v4 = vmax.f32 %v321_v17, 0.0  ;;  %v340_v27 = vmax.f32 %v322_v18, 0.0  ;;  %1171 = vmatprep.subr.mxu0 %v1074_v14  ;;  %v324_v28 = vadd.f32 %v1301_v7, %v299_v19  ;;  %v301_v30 = vmul.f32 %v1289_v6, %v276_v16  ;;  %v365_v18 = vld [vmem:[%s1509_s1 + $0x80] sm:$0xff] }
  0x1f   : > { %v341_v31 = vmax.f32 %v323_v25, 0.0  ;;  %1172 = vmatpush3.msra.mxu0 %v1074_v14  ;;  %v325_v33 = vadd.f32 %v1301_v7, %v300_v26  ;;  %v302_v34 = vmul.f32 %v1289_v6, %v277_v20  ;;  %v303_v35 = vmul.f32 %v1289_v6, %v278_v21  ;;  %v366_v20 = vld [vmem:[%s1509_s1 + $0x88] sm:$0x1] }
  0x20   : > { %1145 = vmatmul.mubr.msk.f32.gmra.mxu0 %vm431_vm1, %v1400_v22  ;;  %v375_v36 = vmul.f32 %v357_v23, %v339_v4  ;;  %v376_v37 = vmul.f32 %v358_v24, %v340_v27  ;;  %v342_v38 = vmax.f32 %v324_v28, 0.0  ;;  %v326_v39 = vadd.f32 %v1301_v7, %v301_v30 }
  0x21   : > { %v377_v41 = vmul.f32 %v359_v29, %v341_v31  ;;  %v343_v42 = vmax.f32 %v325_v33, 0.0  ;;  %v327_v44 = vadd.f32 %v1301_v7, %v302_v34  ;;  %v328_v45 = vadd.f32 %v1301_v7, %v303_v35 }
  0x22   : > { %v416_v49 = vrot.slane %v375_v36, 1  ;;  %v417_v50 = vrot.slane %v376_v37, 1  ;;  %1163 = vmatprep.mubr.msk.f32.mxu1 %vm431_vm1, %v375_v36  ;;  %v378_v52 = vmul.f32 %v360_v32, %v342_v38  ;;  %v344_v53 = vmax.f32 %v326_v39, 0.0 }
  0x23   : > { %v419_v56 = vrot.slane %v377_v41, 1  ;;  %1164 = vmatmul.mubr.msk.f32.gmra.mxu1 %vm431_vm1, %v377_v41  ;;  %v379_v57 = vmul.f32 %v361_v40, %v343_v42  ;;  %v345_v58 = vmax.f32 %v327_v44, 0.0  ;;  %v346_v60 = vmax.f32 %v328_v45, 0.0 }
  0x24   : > { %v418_v61 = vsel %vm403_vm0, %v416_v49, %v417_v50  ;;  %v420_v62 = vrot.slane %v378_v52, 1  ;;  %v380_v63 = vmul.f32 %v362_v43, %v344_v53  ;;  %v304_v0 = vmul.f32 %v1289_v6, %v279_v48 }
  0x25   : > { %1147 = vmatprep.mubr.msk.f32.mxu0 %vm431_vm1, %v418_v61  ;;  %v422_v1 = vrot.slane %v379_v57, 1  ;;  %1166 = vmatprep.mubr.msk.f32.mxu1 %vm431_vm1, %v379_v57  ;;  %v381_v2 = vmul.f32 %v363_v54, %v345_v58  ;;  %v382_v3 = vmul.f32 %v364_v46, %v346_v60  ;;  %v305_v8 = vmul.f32 %v1289_v6, %v280_v55 }
  0x26   : > { %v421_v9 = vsel %vm403_vm0, %v419_v56, %v420_v62  ;;  %v423_v10 = vrot.slane %v380_v63, 1  ;;  %v329_v11 = vadd.f32 %v1301_v7, %v304_v0 }
  0x27   : > { %1148 = vmatmul.mubr.msk.f32.gmra.mxu0 %vm431_vm1, %v421_v9  ;;  %v425_v5 = vrot.slane %v381_v2, 1  ;;  %v426_v14 = vrot.slane %v382_v3, 1  ;;  %1167 = vmatmul.mubr.msk.f32.gmra.mxu1 %vm431_vm1, %v381_v2  ;;  %v330_v15 = vadd.f32 %v1301_v7, %v305_v8 }
  0x28   : > { %v424_v16 = vsel %vm403_vm0, %v422_v1, %v423_v10  ;;  %1189 = vmatprep.mubr.msk.f32.mxu1 %vm431_vm1, %v1379_v12  ;;  %v347_v17 = vmax.f32 %v329_v11, 0.0 }
  0x29   : > { %1150 = vmatprep.mubr.msk.f32.mxu0 %vm431_vm1, %v424_v16  ;;  %v427_v6 = vsel %vm403_vm0, %v425_v5, %v426_v14  ;;  %v348_v19 = vmax.f32 %v330_v15, 0.0 }
  0x2a   : > { %v383_v7 = vmul.f32 %v365_v18, %v347_v17 }
  0x2b   : > { %1151 = vmatmul.mubr.msk.f32.gmra.mxu0 %vm431_vm1, %v427_v6  ;;  %1190 = vmatmul.mubr.msk.f32.vlgmr.msra.gmra.mxu1 %vm431_vm1, %v1382_v13  ;;  %v384_v12 = vmul.f32 %v366_v20, %v348_v19 }
  0x2c   : > { %1173 = vmatprep.mubr.msk.f32.mxu0 %vm431_vm1, %v1348_v47  ;;  %1192 = vmatprep.mubr.msk.f32.mxu1 %vm431_vm1, %v1400_v22  ;;  %v794_v21 = vrot.slane %v383_v7, 1 }
  0x2d   : > { %v795_v13 = vrot.slane %v384_v12, 1 }
  0x2f   : > { %1174 = vmatmul.mubr.msk.f32.vlgmr.msra.gmra.mxu0 %vm431_vm1, %v1353_v51  ;;  %1193 = vmatmul.mubr.msk.f32.gmra.mxu1 %vm431_vm1, %v418_v61  ;;  %v796_v47 = vsel %vm403_vm0, %v794_v21, %v795_v13 }
  0x30   : > { %1176 = vmatprep.mubr.msk.f32.mxu0 %vm431_vm1, %v1359_v59  ;;  %1195 = vmatprep.mubr.msk.f32.mxu1 %vm431_vm1, %v421_v9 }
  0x33   : > { %1177 = vmatmul.mubr.msk.f32.gmra.mxu0 %vm431_vm1, %v375_v36  ;;  %1196 = vmatmul.mubr.msk.f32.gmra.mxu1 %vm431_vm1, %v424_v16 }
  0x34   : > { %1179 = vmatprep.mubr.msk.f32.mxu0 %vm431_vm1, %v377_v41  ;;  %1198 = vmatprep.mubr.msk.f32.mxu1 %vm431_vm1, %v427_v6 }
  0x37   : > { %1180 = vmatmul.mubr.msk.f32.gmra.mxu0 %vm431_vm1, %v379_v57  ;;  %1199 = vmatmul.mubr.msk.f32.gmra.mxu1 %vm431_vm1, %v796_v47 }
  0x38   : > { %1182 = vmatprep.mubr.msk.f32.mxu0 %vm431_vm1, %v381_v2 }
  0x3b   : > { %1183 = vmatmul.mubr.msk.f32.gmra.mxu0 %vm431_vm1, %v383_v7 }
  0xd9   : > { %v1159_v51 = vpop.f32.mrf.mxu1 }
  0xdb   : > { %v635_v59 = vpop.f32.mrf.mxu1 }
  0xdc   : > { %v1143_v22 = vpop.f32.mrf.mxu0 }
  0xdd   : > { %v641_v37 = vadd.f32 %v1159_v51, %v1143_v22 }
  0xde   : > { %v514_v23 = vpop.f32.mrf.mxu0  ;;  %v1162_v24 = vpop.f32.mrf.mxu1 }
  0xdf   : > { %v636_v40 = vadd.f32 %v635_v59, %v514_v23 }
  0xe0   : > { %v1146_v25 = vpop.f32.mrf.mxu0  ;;  %v645_v26 = vpop.f32.mrf.mxu1 }
  0xe1   : > { %v651_v44 = vadd.f32 %v1162_v24, %v1146_v25 }
  0xe2   : > { %v524_v4 = vpop.f32.mrf.mxu0 }
  0xe3   : > { %v1165_v27 = vpop.f32.mrf.mxu1  ;;  %v646_v50 = vadd.f32 %v645_v26, %v524_v4 }
  0xe5   : > { %v655_v28 = vpop.f32.mrf.mxu1 }
  0xe7   : > { %v1149_v29 = vpop.f32.mrf.mxu0  ;;  %v1168_v30 = vpop.f32.mrf.mxu1 }
  0xe8   : > { %v661_v55 = vadd.f32 %v1165_v27, %v1149_v29 }
  0xe9   : > { %v534_v31 = vpop.f32.mrf.mxu0  ;;  %v665_v32 = vpop.f32.mrf.mxu1 }
  0xea   : > { %v656_v63 = vadd.f32 %v655_v28, %v534_v31 }
  0xeb   : > { %v1152_v33 = vpop.f32.mrf.mxu0  ;;  %v1191_v34 = vpop.f32.mrf.mxu1 }
  0xec   : > { %v671_v14 = vadd.f32 %v1168_v30, %v1152_v33 }
  0xed   : > { %v544_v35 = vpop.f32.mrf.mxu0  ;;  %v868_v36 = vpop.f32.mrf.mxu1 }
  0xee   : > { %v666_v15 = vadd.f32 %v665_v32, %v544_v35 }
  0xef   : > { %v1175_v38 = vpop.f32.mrf.mxu0  ;;  %v1194_v39 = vpop.f32.mrf.mxu1 }
  0xf0   : > { %v786_v41 = vadd.f32 %v1175_v38, %v641_v37 }
  0xf1   : > { %v746_v42 = vpop.f32.mrf.mxu0  ;;  %v878_v43 = vpop.f32.mrf.mxu1 }
  0xf2   : > { %v908_v45 = vadd.f32 %v1191_v34, %v786_v41  ;;  %v785_v46 = vadd.f32 %v746_v42, %v636_v40 }
  0xf3   : > { %v1178_v48 = vpop.f32.mrf.mxu0  ;;  %v1197_v49 = vpop.f32.mrf.mxu1 }
  0xf4   : > { %916 = vst [vmem:[%s1491_s19 + $0x8] sm:$0xff] %v908_v45  ;;  %v907_v52 = vadd.f32 %v868_v36, %v785_v46  ;;  %v788_v53 = vadd.f32 %v1178_v48, %v651_v44  ;;  %v938_v60 = vmul.f32 %v908_v45, %v908_v45 }
  0xf5   : > { %v756_v54 = vpop.f32.mrf.mxu0  ;;  %v888_v62 = vpop.f32.mrf.mxu1 }
  0xf6   : > { %915 = vst [vmem:[%s1491_s19] sm:$0xff] %v907_v52  ;;  %v937_v56 = vmul.f32 %v907_v52, %v907_v52  ;;  %v910_v57 = vadd.f32 %v1194_v39, %v788_v53  ;;  %v787_v58 = vadd.f32 %v756_v54, %v646_v50  ;;  %v923_v0 = vadd.f32 %v908_v45, %v907_v52 }
  0xf7   : > { %v1181_v61 = vpop.f32.mrf.mxu0  ;;  %v1200_v17 = vpop.f32.mrf.mxu1 }
  0xf8   : > { %918 = vst [vmem:[%s1491_s19 + $0x18] sm:$0xff] %v910_v57  ;;  %v909_v1 = vadd.f32 %v878_v43, %v787_v58  ;;  %v790_v2 = vadd.f32 %v1181_v61, %v661_v55  ;;  %v945_v3 = vadd.f32 %v938_v60, %v937_v56  ;;  %v940_v6 = vmul.f32 %v910_v57, %v910_v57 }
  0xf9   : > { %v766_v8 = vpop.f32.mrf.mxu0  ;;  %v898_v22 = vpop.f32.mrf.mxu1 }
  0xfa   : > { %917 = vst [vmem:[%s1491_s19 + $0x10] sm:$0xff] %v909_v1  ;;  %v924_v9 = vadd.f32 %v923_v0, %v909_v1  ;;  %v939_v10 = vmul.f32 %v909_v1, %v909_v1  ;;  %v912_v11 = vadd.f32 %v1197_v49, %v790_v2  ;;  %v789_v5 = vadd.f32 %v766_v8, %v656_v63 }
  0xfb   : > { %v1184_v16 = vpop.f32.mrf.mxu0 }
  0xfc   : > { %v946_v18 = vadd.f32 %v945_v3, %v939_v10  ;;  %920 = vst [vmem:[%s1491_s19 + $0x28] sm:$0xff] %v912_v11  ;;  %v911_v19 = vadd.f32 %v888_v62, %v789_v5  ;;  %v925_v20 = vadd.f32 %v924_v9, %v910_v57  ;;  %v792_v7 = vadd.f32 %v1184_v16, %v671_v14 }
  0xfd   : > { %v776_v12 = vpop.f32.mrf.mxu0  ;;  %v942_v23 = vmul.f32 %v912_v11, %v912_v11 }
  0xfe   : > { %919 = vst [vmem:[%s1491_s19 + $0x20] sm:$0xff] %v911_v19  ;;  %v926_v21 = vadd.f32 %v925_v20, %v911_v19  ;;  %v941_v13 = vmul.f32 %v911_v19, %v911_v19  ;;  %v947_v47 = vadd.f32 %v946_v18, %v940_v6  ;;  %v791_v51 = vadd.f32 %v776_v12, %v666_v15 }
  0xff   : > { %v914_v59 = vadd.f32 %v1200_v17, %v792_v7 }
 0x100   : > { %v948_v24 = vadd.f32 %v947_v47, %v941_v13  ;;  %v913_v25 = vadd.f32 %v898_v22, %v791_v51  ;;  %v927_v26 = vadd.f32 %v926_v21, %v912_v11 }
 0x101   : > { %922 = vst [vmem:[%s1491_s19 + $0x38] sm:$0xff] %v914_v59  ;;  %v944_v29 = vmul.f32 %v914_v59, %v914_v59 }
 0x102   : > { %921 = vst [vmem:[%s1491_s19 + $0x30] sm:$0xff] %v913_v25  ;;  %v928_v4 = vadd.f32 %v927_v26, %v913_v25  ;;  %v943_v27 = vmul.f32 %v913_v25, %v913_v25  ;;  %v949_v28 = vadd.f32 %v948_v24, %v942_v23 }
 0x104   : > { %v929_v30 = vadd.f32 %v928_v4, %v914_v59  ;;  %v950_v31 = vadd.f32 %v949_v28, %v943_v27 }
 0x106   : > { %v930_v32 = vrot.slane %v929_v30, 4  ;;  %v951_v33 = vadd.f32 %v950_v31, %v944_v29 }
 0x108   : > { %v931_v34 = vadd.f32 %v930_v32, %v929_v30  ;;  %v952_v35 = vrot.slane %v951_v33, 4 }
 0x10a   : > { %v932_v36 = vrot.slane %v931_v34, 2  ;;  %v953_v37 = vadd.f32 %v952_v35, %v951_v33 }
 0x10c   : > { %v933_v38 = vadd.f32 %v932_v36, %v931_v34  ;;  %v954_v39 = vrot.slane %v953_v37, 2 }
 0x10e   : > { %v934_v40 = vrot.slane %v933_v38, 1  ;;  %v955_v41 = vadd.f32 %v954_v39, %v953_v37 }
 0x110   : > { %v935_v42 = vadd.f32 %v934_v40, %v933_v38  ;;  %v956_v43 = vrot.slane %v955_v41, 1 }
 0x112   : > { %936 = vst [vmem:[%s262_s25] sm:$0x1] %v935_v42  ;;  %v957_v44 = vadd.f32 %v956_v43, %v955_v41 }
 0x114   : > { %958 = vst [vmem:[%s262_s25 + $0x1] sm:$0x1] %v957_v44 }
 0x115 PF: > { %s17_s21 = sadd.s32 1, %s1216_s21  }
 0x116   : > { %p14_p4 = scmp.ge.s32.totalorder %s17_s21, 4  }
 0x118   :  { %16 = sbr.rel (!%p14_p4) target bundleno = 1 (0x1), region = 85 }

// kernel: preact_block_forward.5
= control target key start
LH: loop header
LB: loop body
LE: loop exit
PB: predicated region body
PF: predicated region fallthrough
CT: control target
= control target key end

     0   :  { %s2042_s15 = smov 0   ;;  %s2325_s0 = inlined_call_operand.vmem [shape: f32[2,64,128], index: 0, kind: input, shape index: {}]   ;;  %s2326_s1 = inlined_call_operand.vmem [shape: f32[1,8], index: 1, kind: input, shape index: {}]   ;;  %s2327_s2 = inlined_call_operand.vmem [shape: f32[1,8], index: 2, kind: input, shape index: {}]   ;;  %s2328_s3 = inlined_call_operand.vmem [shape: f32[9,8,128], index: 3, kind: input, shape index: {}]   ;;  %s2329_s4 = inlined_call_operand.vmem [shape: f32[2,64,128], index: 4, kind: output, shape index: {}]  }
   0x1 LB: > { %s1693_s16 = sadd.s32 4294967295, %s2013_s15   ;;  %p1697_p0 = scmp.ge.s32.totalorder %s2013_s15, 1  ;;  %s2013_s15 = sphi %s2042_s15, %s14_s15  }
   0x2   : > { %p162_p1 = scmp.lt.s32.totalorder %s2013_s15, 3 }
   0x4   : > { %p163_p2 = pnand %p1697_p0, %p162_p1 }
   0x5   : > { %p2055_p3 = scmp.lt.s32.totalorder (!%p163_p2), %s1693_s16, 1  ;;  %s2016_s6 = smov (!%p163_p2), 120  }
   0x6   : > { %166 = sbr.rel (%p163_p2) target bundleno = 302 (0x12e), region = 36 }
   0xb   : > { %v1704_v0 = vld [vmem:[%s2328_s3 + $0x8] sm:$0xff]  ;;  %vm244_vm0 = vcmask 64512   ;;  %vm246_vm1 = vcmask 58368   ;;  %v2062_v1 = vld [vmem:[%s2328_s3] sm:$0xff]  ;;  %v2015_v2 = vmov 0.0   ;;  %v2087_v3 = vld [vmem:[%s2328_s3 + $0x10] sm:$0xff] }
   0xc   : > { %1995 = vmatprep.subr.mxu1 %v1704_v0  ;;  %1869 = vmatprep.subr.mxu0 %v1704_v0  ;;  %245 = vst.msk [vmem:[#allocation2] sm:$0xff] %vm244_vm0, %v2015_v2  ;;  %248 = vst.msk [vmem:[#allocation2 + $0x10] sm:$0xff] %vm244_vm0, %v2015_v2  ;;  %s2332_s16 = smov (!%p2055_p3, %s1693_s16), 1  ;;  %v1702_v4 = vld [vmem:[%s2326_s1] ss:$0 sm:$0xff]  ;;  %v1730_v44 = vld [vmem:[%s2328_s3 + $0x18] sm:$0xff] }
   0xd   : > { %247 = vst.msk [vmem:[#allocation2 + $0x8] sm:$0x3] %vm246_vm1, %v2015_v2  ;;  %249 = vst.msk [vmem:[#allocation2 + $0x18] sm:$0x3] %vm246_vm1, %v2015_v2  ;;  %1996 = vmatpush3.msra.mxu1 %v1704_v0  ;;  %1870 = vmatpush3.msra.mxu0 %v1704_v0  ;;  %s1786_s24 = sshll.u32 %s2332_s16, 6  ;;  %v1739_v46 = vld [vmem:[%s2328_s3 + $0x20] sm:$0xff] }
   0xe   : > { %250 = vst.msk [vmem:[#allocation2 + $0x20] sm:$0xff] %vm244_vm0, %v2015_v2  ;;  %252 = vst.msk [vmem:[#allocation2 + $0x30] sm:$0xff] %vm244_vm0, %v2015_v2  ;;  %1883 = vmatprep.subr.mxu1 %v2062_v1  ;;  %1897 = vmatprep.subr.mxu0 %v2087_v3  ;;  %s192_s29 = scalar_lea.vmem %s2325_s0, %s1786_s24  ;;  %v1703_v5 = vld [vmem:[%s2327_s2] ss:$0 sm:$0xff]  ;;  %v1748_v54 = vld [vmem:[%s2328_s3 + $0x28] sm:$0xff]  ;;  %s2290_s23 = scalar_lea.vmem %s2329_s4, %s1786_s24 }
   0xf   : > { %251 = vst.msk [vmem:[#allocation2 + $0x28] sm:$0x3] %vm246_vm1, %v2015_v2  ;;  %253 = vst.msk [vmem:[#allocation2 + $0x38] sm:$0x3] %vm246_vm1, %v2015_v2  ;;  %v201_v6 = vld [vmem:[%s192_s29 + $0x18] sm:$0xff]  ;;  %v198_v7 = vld [vmem:[%s192_s29] sm:$0xff] }
  0x10   : > { %254 = vst.msk [vmem:[#allocation2 + $0x40] sm:$0xff] %vm244_vm0, %v2015_v2  ;;  %256 = vst.msk [vmem:[#allocation2 + $0x50] sm:$0xff] %vm244_vm0, %v2015_v2  ;;  %v202_v8 = vld [vmem:[%s192_s29 + $0x20] sm:$0xff]  ;;  %v216_v9 = vmul.f32 %v1702_v4, %v201_v6  ;;  %v213_v10 = vmul.f32 %v1702_v4, %v198_v7  ;;  %v199_v12 = vld [vmem:[%s192_s29 + $0x8] sm:$0xff]  ;;  %1598 = vrot.lane.b32.xlu0 %v198_v7, %s2016_s6 }
  0x11   : > { %255 = vst.msk [vmem:[#allocation2 + $0x48] sm:$0x3] %vm246_vm1, %v2015_v2  ;;  %257 = vst.msk [vmem:[#allocation2 + $0x58] sm:$0x3] %vm246_vm1, %v2015_v2  ;;  %v217_v11 = vmul.f32 %v1702_v4, %v202_v8  ;;  %v203_v13 = vld [vmem:[%s192_s29 + $0x28] sm:$0xff]  ;;  %v200_v14 = vld [vmem:[%s192_s29 + $0x10] sm:$0xff]  ;;  %v214_v16 = vmul.f32 %v1702_v4, %v199_v12 }
  0x12   : > { %258 = vst.msk [vmem:[#allocation2 + $0x60] sm:$0xff] %vm244_vm0, %v2015_v2  ;;  %260 = vst.msk [vmem:[#allocation2 + $0x70] sm:$0xff] %vm244_vm0, %v2015_v2  ;;  %v218_v17 = vmul.f32 %v1702_v4, %v203_v13  ;;  %v215_v18 = vmul.f32 %v1702_v4, %v200_v14  ;;  %v204_v19 = vld [vmem:[%s192_s29 + $0x30] sm:$0xff]  ;;  %1602 = vrot.lane.b32.xlu1 %v200_v14, %s2016_s6  ;;  %v231_v20 = vadd.f32 %v1703_v5, %v216_v9  ;;  %v205_v24 = vld [vmem:[%s192_s29 + $0x38] sm:$0xff] }
  0x13   : > { %259 = vst.msk [vmem:[#allocation2 + $0x68] sm:$0x3] %vm246_vm1, %v2015_v2  ;;  %261 = vst.msk [vmem:[#allocation2 + $0x78] sm:$0x3] %vm246_vm1, %v2015_v2  ;;  %v228_v21 = vadd.f32 %v1703_v5, %v213_v10  ;;  %v232_v22 = vadd.f32 %v1703_v5, %v217_v11  ;;  %v219_v23 = vmul.f32 %v1702_v4, %v204_v19  ;;  %v275_v49 = vld [vmem:[#allocation2] sm:$0xff]  ;;  %v1757_v56 = vld [vmem:[%s2328_s3 + $0x30] sm:$0xff] }
  0x14   : > { %262 = vst.msk [vmem:[#allocation2 + $0x80] sm:$0xff] %vm244_vm0, %v2015_v2  ;;  %264 = vst.msk [vmem:[#allocation2 + $0x90] sm:$0xff] %vm244_vm0, %v2015_v2  ;;  %v284_v15 = vld [vmem:[#allocation2 + $0x1] sm:$0xff]  ;;  %v229_v25 = vadd.f32 %v1703_v5, %v214_v16  ;;  %v233_v26 = vadd.f32 %v1703_v5, %v218_v17  ;;  %v230_v27 = vadd.f32 %v1703_v5, %v215_v18  ;;  %v239_v29 = vmax.f32 %v231_v20, 0.0 }
  0x15   : > { %263 = vst.msk [vmem:[#allocation2 + $0x88] sm:$0x3] %vm246_vm1, %v2015_v2  ;;  %265 = vst.msk [vmem:[#allocation2 + $0x98] sm:$0x3] %vm246_vm1, %v2015_v2  ;;  %1871 = vmatprep.mubr.msk.f32.mxu0 %vm244_vm0, %v284_v15  ;;  %v220_v28 = vmul.f32 %v1702_v4, %v205_v24  ;;  %v236_v30 = vmax.f32 %v228_v21, 0.0  ;;  %v240_v31 = vmax.f32 %v232_v22, 0.0  ;;  %v234_v32 = vadd.f32 %v1703_v5, %v219_v23 }
  0x16   : > { %1600 = vrot.lane.b32.xlu0 %v199_v12, %s2016_s6  ;;  %v237_v33 = vmax.f32 %v229_v25, 0.0  ;;  %v241_v34 = vmax.f32 %v233_v26, 0.0  ;;  %v238_v35 = vmax.f32 %v230_v27, 0.0  ;;  %1604 = vrot.lane.b32.xlu1 %v201_v6, %s2016_s6  ;;  %270 = vst.msk [vmem:[#allocation2 + $0x41] sm:$0xff] %vm244_vm0, %v239_v29  ;;  %v552_v48 = vld [vmem:[#allocation2 + $0x2] sm:$0xff]  ;;  %v1766_v2 = vld [vmem:[%s2328_s3 + $0x38] sm:$0xff] }
  0x17   : > { %v235_v36 = vadd.f32 %v1703_v5, %v220_v28  ;;  %267 = vst.msk [vmem:[#allocation2 + $0x11] sm:$0xff] %vm244_vm0, %v236_v30  ;;  %271 = vst.msk [vmem:[#allocation2 + $0x51] sm:$0xff] %vm244_vm0, %v240_v31  ;;  %v242_v37 = vmax.f32 %v234_v32, 0.0 }
  0x18   : > { %268 = vst.msk [vmem:[#allocation2 + $0x21] sm:$0xff] %vm244_vm0, %v237_v33  ;;  %272 = vst.msk [vmem:[#allocation2 + $0x61] sm:$0xff] %vm244_vm0, %v241_v34 }
  0x19   : > { %269 = vst.msk [vmem:[#allocation2 + $0x31] sm:$0xff] %vm244_vm0, %v238_v35  ;;  %v243_v38 = vmax.f32 %v235_v36, 0.0  ;;  %273 = vst.msk [vmem:[#allocation2 + $0x71] sm:$0xff] %vm244_vm0, %v242_v37 }
  0x1a   : > { %1606 = vrot.lane.b32.xlu0 %v202_v8, %s2016_s6  ;;  %1608 = vrot.lane.b32.xlu1 %v203_v13, %s2016_s6 }
  0x1b   : > { %274 = vst.msk [vmem:[#allocation2 + $0x81] sm:$0xff] %vm244_vm0, %v243_v38  ;;  %v1148_v6 = vld [vmem:[#allocation2 + $0x90] sm:$0xff] }
  0x1c   : > { %v1442_v8 = vld [vmem:[#allocation2 + $0x92] sm:$0xff] }
  0x1d   : > { %v2125_v39 = vld [vmem:[#allocation2 + $0x41] sm:$0xff]  ;;  %v1295_v9 = vld [vmem:[#allocation2 + $0x91] sm:$0xff] }
  0x1e   : > { %1610 = vrot.lane.b32.xlu0 %v204_v19, %s2016_s6  ;;  %v285_v40 = vld [vmem:[#allocation2 + $0x11] sm:$0xff]  ;;  %1612 = vrot.lane.b32.xlu1 %v205_v24, %s2016_s6  ;;  %v2174_v58 = vld [vmem:[#allocation2 + $0x42] sm:$0xff] }
  0x1f   : > { %v2127_v41 = vld [vmem:[#allocation2 + $0x51] sm:$0xff]  ;;  %1877 = vmatprep.mubr.msk.f32.mxu1 %vm244_vm0, %v2125_v39  ;;  %1872 = vmatmul.mubr.msk.f32.vlgmr.msra.gmra.mxu0 %vm244_vm0, %v285_v40  ;;  %v2133_v42 = vld [vmem:[#allocation2 + $0x21] sm:$0xff] }
  0x20   : > { %v2135_v43 = vld [vmem:[#allocation2 + $0x61] sm:$0xff]  ;;  %1878 = vmatmul.mubr.msk.f32.vlgmr.msra.gmra.mxu1 %vm244_vm0, %v2127_v41  ;;  %1898 = vmatpush3.msra.mxu0 %v2087_v3  ;;  %v2143_v45 = vld [vmem:[#allocation2 + $0x31] sm:$0xff] }
  0x21   : > { %1884 = vmatpush3.msra.mxu1 %v2062_v1  ;;  %1874 = vmatprep.mubr.msk.f32.mxu0 %vm244_vm0, %v2133_v42  ;;  %v2151_v47 = vld [vmem:[#allocation2 + $0x71] sm:$0xff]  ;;  %v277_v52 = vld [vmem:[#allocation2 + $0x20] sm:$0xff] }
  0x22   : > { %1880 = vmatprep.mubr.msk.f32.mxu1 %vm244_vm0, %v2135_v43  ;;  %1911 = vmatprep.subr.mxu1 %v1730_v44  ;;  %v553_v50 = vld [vmem:[#allocation2 + $0x12] sm:$0xff]  ;;  %v2162_v53 = vld [vmem:[#allocation2 + $0x22] sm:$0xff] }
  0x23   : > { %1875 = vmatmul.mubr.msk.f32.gmra.mxu0 %vm244_vm0, %v2143_v45  ;;  %1925 = vmatprep.subr.mxu0 %v1739_v46  ;;  %v276_v51 = vld [vmem:[#allocation2 + $0x10] sm:$0xff]  ;;  %v279_v59 = vld [vmem:[#allocation2 + $0x40] sm:$0xff] }
  0x24   : > { %1881 = vmatmul.mubr.msk.f32.gmra.mxu1 %vm244_vm0, %v2151_v47  ;;  %1899 = vmatprep.mubr.msk.f32.mxu0 %vm244_vm0, %v552_v48  ;;  %v2168_v55 = vld [vmem:[#allocation2 + $0x32] sm:$0xff]  ;;  %v558_v62 = vld [vmem:[#allocation2 + $0x62] sm:$0xff] }
  0x25   : > { %1885 = vmatprep.mubr.msk.f32.mxu1 %vm244_vm0, %v275_v49  ;;  %v278_v57 = vld [vmem:[#allocation2 + $0x30] sm:$0xff]  ;;  %v281_v63 = vld [vmem:[#allocation2 + $0x60] sm:$0xff] }
  0x26   : > { %v2183_v60 = vld [vmem:[#allocation2 + $0x52] sm:$0xff]  ;;  %v1775_v3 = vld [vmem:[%s2328_s3 + $0x40] sm:$0xff] }
  0x27   : > { %1900 = vmatmul.mubr.msk.f32.vlgmr.msra.gmra.mxu0 %vm244_vm0, %v553_v50  ;;  %v280_v61 = vld [vmem:[#allocation2 + $0x50] sm:$0xff]  ;;  %v853_v4 = vld [vmem:[#allocation2 + $0x81] sm:$0xff] }
  0x28   : > { %1886 = vmatmul.mubr.msk.f32.vlgmr.msra.gmra.mxu1 %vm244_vm0, %v276_v51  ;;  %1926 = vmatpush3.msra.mxu0 %v1739_v46  ;;  %v559_v0 = vld [vmem:[#allocation2 + $0x72] sm:$0xff]  ;;  %v706_v5 = vld [vmem:[#allocation2 + $0x80] sm:$0xff] }
  0x29   : > { %1912 = vmatpush3.msra.mxu1 %v1730_v44  ;;  %1888 = vmatprep.mubr.msk.f32.mxu1 %vm244_vm0, %v277_v52  ;;  %v282_v1 = vld [vmem:[#allocation2 + $0x70] sm:$0xff]  ;;  %v1000_v7 = vld [vmem:[#allocation2 + $0x82] sm:$0xff] }
  0x2a   : > { %1902 = vmatprep.mubr.msk.f32.mxu0 %vm244_vm0, %v2162_v53  ;;  %1939 = vmatprep.subr.mxu1 %v1748_v54 }
  0x2b   : > { %1903 = vmatmul.mubr.msk.f32.gmra.mxu0 %vm244_vm0, %v2168_v55  ;;  %1953 = vmatprep.subr.mxu0 %v1757_v56 }
  0x2c   : > { %1889 = vmatmul.mubr.msk.f32.gmra.mxu1 %vm244_vm0, %v278_v57  ;;  %1905 = vmatprep.mubr.msk.f32.mxu0 %vm244_vm0, %v2174_v58 }
  0x2d   : > { %1891 = vmatprep.mubr.msk.f32.mxu1 %vm244_vm0, %v279_v59 }
  0x2f   : > { %1906 = vmatmul.mubr.msk.f32.gmra.mxu0 %vm244_vm0, %v2183_v60 }
  0x30   : > { %1892 = vmatmul.mubr.msk.f32.gmra.mxu1 %vm244_vm0, %v280_v61  ;;  %1908 = vmatprep.mubr.msk.f32.mxu0 %vm244_vm0, %v558_v62 }
  0x31   : > { %1894 = vmatprep.mubr.msk.f32.mxu1 %vm244_vm0, %v281_v63 }
  0x33   : > { %1909 = vmatmul.mubr.msk.f32.gmra.mxu0 %vm244_vm0, %v559_v0 }
  0x34   : > { %1895 = vmatmul.mubr.msk.f32.gmra.mxu1 %vm244_vm0, %v282_v1  ;;  %1927 = vmatprep.mubr.msk.f32.mxu0 %vm244_vm0, %v285_v40 }
  0x35   : > { %1913 = vmatprep.mubr.msk.f32.mxu1 %vm244_vm0, %v276_v51 }
  0x37   : > { %1928 = vmatmul.mubr.msk.f32.vlgmr.msra.gmra.mxu0 %vm244_vm0, %v2133_v42 }
  0x38   : > { %1914 = vmatmul.mubr.msk.f32.vlgmr.msra.gmra.mxu1 %vm244_vm0, %v277_v52  ;;  %1954 = vmatpush3.msra.mxu0 %v1757_v56 }
  0x39   : > { %1940 = vmatpush3.msra.mxu1 %v1748_v54  ;;  %1916 = vmatprep.mubr.msk.f32.mxu1 %vm244_vm0, %v278_v57 }
  0x3a   : > { %1930 = vmatprep.mubr.msk.f32.mxu0 %vm244_vm0, %v2143_v45  ;;  %1967 = vmatprep.subr.mxu1 %v1766_v2 }
  0x3b   : > { %1931 = vmatmul.mubr.msk.f32.gmra.mxu0 %vm244_vm0, %v2125_v39  ;;  %1981 = vmatprep.subr.mxu0 %v1775_v3 }
  0x3c   : > { %1917 = vmatmul.mubr.msk.f32.gmra.mxu1 %vm244_vm0, %v279_v59  ;;  %1933 = vmatprep.mubr.msk.f32.mxu0 %vm244_vm0, %v2127_v41 }
  0x3d   : > { %1919 = vmatprep.mubr.msk.f32.mxu1 %vm244_vm0, %v280_v61 }
  0x3f   : > { %1934 = vmatmul.mubr.msk.f32.gmra.mxu0 %vm244_vm0, %v2135_v43 }
  0x40   : > { %1920 = vmatmul.mubr.msk.f32.gmra.mxu1 %vm244_vm0, %v281_v63  ;;  %1936 = vmatprep.mubr.msk.f32.mxu0 %vm244_vm0, %v2151_v47 }
  0x41   : > { %1922 = vmatprep.mubr.msk.f32.mxu1 %vm244_vm0, %v282_v1 }
  0x43   : > { %1937 = vmatmul.mubr.msk.f32.gmra.mxu0 %vm244_vm0, %v853_v4 }
  0x44   : > { %1923 = vmatmul.mubr.msk.f32.gmra.mxu1 %vm244_vm0, %v706_v5  ;;  %1955 = vmatprep.mubr.msk.f32.mxu0 %vm244_vm0, %v277_v52 }
  0x45   : > { %1941 = vmatprep.mubr.msk.f32.mxu1 %vm244_vm0, %v553_v50 }
  0x47   : > { %1956 = vmatmul.mubr.msk.f32.vlgmr.msra.gmra.mxu0 %vm244_vm0, %v278_v57 }
  0x48   : > { %1942 = vmatmul.mubr.msk.f32.vlgmr.msra.gmra.mxu1 %vm244_vm0, %v2162_v53  ;;  %1982 = vmatpush3.msra.mxu0 %v1775_v3 }
  0x49   : > { %1968 = vmatpush3.msra.mxu1 %v1766_v2  ;;  %1944 = vmatprep.mubr.msk.f32.mxu1 %vm244_vm0, %v2168_v55 }
  0x4a   : > { %1958 = vmatprep.mubr.msk.f32.mxu0 %vm244_vm0, %v279_v59 }
  0x4b   : > { %1959 = vmatmul.mubr.msk.f32.gmra.mxu0 %vm244_vm0, %v280_v61 }
  0x4c   : > { %1945 = vmatmul.mubr.msk.f32.gmra.mxu1 %vm244_vm0, %v2174_v58  ;;  %1961 = vmatprep.mubr.msk.f32.mxu0 %vm244_vm0, %v281_v63 }
  0x4d   : > { %1947 = vmatprep.mubr.msk.f32.mxu1 %vm244_vm0, %v2183_v60 }
  0x4f   : > { %1962 = vmatmul.mubr.msk.f32.gmra.mxu0 %vm244_vm0, %v282_v1 }
  0x50   : > { %1948 = vmatmul.mubr.msk.f32.gmra.mxu1 %vm244_vm0, %v558_v62  ;;  %1964 = vmatprep.mubr.msk.f32.mxu0 %vm244_vm0, %v706_v5 }
  0x51   : > { %1950 = vmatprep.mubr.msk.f32.mxu1 %vm244_vm0, %v559_v0 }
  0x53   : > { %1965 = vmatmul.mubr.msk.f32.gmra.mxu0 %vm244_vm0, %v1148_v6 }
  0x54   : > { %1951 = vmatmul.mubr.msk.f32.gmra.mxu1 %vm244_vm0, %v1000_v7  ;;  %1983 = vmatprep.mubr.msk.f32.mxu0 %vm244_vm0, %v2162_v53 }
  0x55   : > { %1969 = vmatprep.mubr.msk.f32.mxu1 %vm244_vm0, %v2133_v42 }
  0x57   : > { %1984 = vmatmul.mubr.msk.f32.vlgmr.msra.gmra.mxu0 %vm244_vm0, %v2168_v55 }
  0x58   : > { %1970 = vmatmul.mubr.msk.f32.vlgmr.msra.gmra.mxu1 %vm244_vm0, %v2143_v45  ;;  %1986 = vmatprep.mubr.msk.f32.mxu0 %vm244_vm0, %v2174_v58 }
  0x59   : > { %1972 = vmatprep.mubr.msk.f32.mxu1 %vm244_vm0, %v2125_v39 }
  0x5b   : > { %1987 = vmatmul.mubr.msk.f32.gmra.mxu0 %vm244_vm0, %v2183_v60 }
  0x5c   : > { %1973 = vmatmul.mubr.msk.f32.gmra.mxu1 %vm244_vm0, %v2127_v41  ;;  %1989 = vmatprep.mubr.msk.f32.mxu0 %vm244_vm0, %v558_v62 }
  0x5d   : > { %1975 = vmatprep.mubr.msk.f32.mxu1 %vm244_vm0, %v2135_v43 }
  0x5f   : > { %1990 = vmatmul.mubr.msk.f32.gmra.mxu0 %vm244_vm0, %v559_v0 }
  0x60   : > { %1976 = vmatmul.mubr.msk.f32.gmra.mxu1 %vm244_vm0, %v2151_v47  ;;  %1992 = vmatprep.mubr.msk.f32.mxu0 %vm244_vm0, %v1000_v7 }
  0x61   : > { %1978 = vmatprep.mubr.msk.f32.mxu1 %vm244_vm0, %v853_v4 }
  0x63   : > { %1993 = vmatmul.mubr.msk.f32.gmra.mxu0 %vm244_vm0, %v1442_v8 }
  0x64   : > { %1979 = vmatmul.mubr.msk.f32.gmra.mxu1 %vm244_vm0, %v1295_v9 }
  0xdf   : > { %v1873_v10 = vpop.f32.mrf.mxu0 }
  0xe0   : > { %v1879_v11 = vpop.f32.mrf.mxu1 }
  0xe1   : > { %v384_v12 = vpop.f32.mrf.mxu0 }
  0xe2   : > { %v404_v13 = vpop.f32.mrf.mxu1 }
  0xe3   : > { %v1876_v14 = vpop.f32.mrf.mxu0 }
  0xe4   : > { %v1882_v15 = vpop.f32.mrf.mxu1 }
  0xe5   : > { %v394_v16 = vpop.f32.mrf.mxu0 }
  0xe6   : > { %v2267_v17 = vpop.f32.mrf.mxu1 }
  0xe7   : > { %v1901_v18 = vpop.f32.mrf.mxu0 }
  0xe8   : > { %v1887_v19 = vpop.f32.mrf.mxu1 }
  0xe9   : > { %v652_v20 = vpop.f32.mrf.mxu0  ;;  %v519_v50 = vadd.f32 %v1887_v19, %v1873_v10 }
  0xea   : > { %v513_v21 = vpop.f32.mrf.mxu1 }
  0xeb   : > { %v1904_v22 = vpop.f32.mrf.mxu0  ;;  %v514_v53 = vadd.f32 %v513_v21, %v384_v12  ;;  %v692_v56 = vadd.f32 %v1901_v18, %v519_v50 }
  0xec   : > { %v1890_v23 = vpop.f32.mrf.mxu1 }
  0xed   : > { %v662_v24 = vpop.f32.mrf.mxu0  ;;  %v529_v57 = vadd.f32 %v1890_v23, %v1876_v14  ;;  %v691_v60 = vadd.f32 %v652_v20, %v514_v53  ;;  %v1599_v23 = vpop.permute.xlu0 %1598 }
  0xee   : > { %v523_v25 = vpop.f32.mrf.mxu1 }
  0xef   : > { %v1907_v26 = vpop.f32.mrf.mxu0  ;;  %v524_v61 = vadd.f32 %v523_v25, %v394_v16  ;;  %v694_v2 = vadd.f32 %v1904_v22, %v529_v57 }
  0xf0   : > { %v1893_v27 = vpop.f32.mrf.mxu1 }
  0xf1   : > { %v672_v28 = vpop.f32.mrf.mxu0  ;;  %v539_v0 = vadd.f32 %v1893_v27, %v1879_v11  ;;  %v693_v7 = vadd.f32 %v662_v24, %v524_v61  ;;  %v1601_v53 = vpop.permute.xlu0 %1600 }
  0xf2   : > { %v533_v29 = vpop.f32.mrf.mxu1 }
  0xf3   : > { %v1910_v30 = vpop.f32.mrf.mxu0  ;;  %v534_v5 = vadd.f32 %v533_v29, %v404_v13  ;;  %v696_v12 = vadd.f32 %v1907_v26, %v539_v0  ;;  %v2280_v13 = vpop.permute.xlu1 %1602 }
  0xf4   : > { %v1896_v31 = vpop.f32.mrf.mxu1 }
  0xf5   : > { %v2269_v32 = vpop.f32.mrf.mxu0  ;;  %v549_v18 = vadd.f32 %v1896_v31, %v1882_v15  ;;  %v695_v11 = vadd.f32 %v672_v28, %v534_v5 }
  0xf6   : > { %v543_v33 = vpop.f32.mrf.mxu1 }
  0xf7   : > { %v1929_v34 = vpop.f32.mrf.mxu0  ;;  %v544_v22 = vadd.f32 %v543_v33, %v2267_v17  ;;  %v698_v26 = vadd.f32 %v1910_v30, %v549_v18 }
  0xf8   : > { %v1915_v35 = vpop.f32.mrf.mxu1 }
  0xf9   : > { %v946_v36 = vpop.f32.mrf.mxu0  ;;  %v839_v62 = vadd.f32 %v1915_v35, %v692_v56  ;;  %v697_v28 = vadd.f32 %v2269_v32, %v544_v22 }
  0xfa   : > { %v799_v37 = vpop.f32.mrf.mxu1 }
  0xfb   : > { %v1932_v38 = vpop.f32.mrf.mxu0  ;;  %v838_v3 = vadd.f32 %v799_v37, %v691_v60  ;;  %v986_v8 = vadd.f32 %v1929_v34, %v839_v62 }
  0xfc   : > { %v1918_v39 = vpop.f32.mrf.mxu1 }
  0xfd   : > { %v956_v40 = vpop.f32.mrf.mxu0  ;;  %v841_v9 = vadd.f32 %v1918_v39, %v694_v2  ;;  %v985_v19 = vadd.f32 %v946_v36, %v838_v3 }
  0xfe   : > { %v809_v41 = vpop.f32.mrf.mxu1 }
  0xff   : > { %v1935_v42 = vpop.f32.mrf.mxu0  ;;  %v840_v21 = vadd.f32 %v809_v41, %v693_v7  ;;  %v988_v24 = vadd.f32 %v1932_v38, %v841_v9 }
 0x100   : > { %v1921_v43 = vpop.f32.mrf.mxu1 }
 0x101   : > { %v2271_v44 = vpop.f32.mrf.mxu0  ;;  %v843_v25 = vadd.f32 %v1921_v43, %v696_v12  ;;  %v987_v35 = vadd.f32 %v956_v40, %v840_v21 }
 0x102   : > { %v819_v45 = vpop.f32.mrf.mxu1 }
 0x103   : > { %v2273_v46 = vpop.f32.mrf.mxu0  ;;  %v842_v15 = vadd.f32 %v819_v45, %v695_v11  ;;  %v990_v41 = vadd.f32 %v1935_v42, %v843_v25  ;;  %v1605_v42 = vpop.permute.xlu1 %1604 }
 0x104   : > { %v1924_v47 = vpop.f32.mrf.mxu1 }
 0x105   : > { %v2275_v48 = vpop.f32.mrf.mxu0  ;;  %v845_v17 = vadd.f32 %v1924_v47, %v698_v26  ;;  %v989_v30 = vadd.f32 %v2271_v44, %v842_v15 }
 0x106   : > { %v829_v49 = vpop.f32.mrf.mxu1 }
 0x107   : > { %v1957_v51 = vpop.f32.mrf.mxu0  ;;  %v844_v40 = vadd.f32 %v829_v49, %v697_v28  ;;  %v992_v56 = vadd.f32 %v2273_v46, %v845_v17 }
 0x108   : > { %v1943_v52 = vpop.f32.mrf.mxu1 }
 0x109   : > { %v1241_v54 = vpop.f32.mrf.mxu0  ;;  %v1133_v20 = vadd.f32 %v1943_v52, %v986_v8  ;;  %v991_v49 = vadd.f32 %v2275_v48, %v844_v40  ;;  %v1609_v8 = vpop.permute.xlu1 %1608 }
 0x10a   : > { %v1093_v55 = vpop.f32.mrf.mxu1 }
 0x10b   : > { %v1960_v58 = vpop.f32.mrf.mxu0  ;;  %v1132_v29 = vadd.f32 %v1093_v55, %v985_v19  ;;  %v1281_v36 = vadd.f32 %v1957_v51, %v1133_v20  ;;  %v1607_v19 = vpop.permute.xlu0 %1606 }
 0x10c   : > { %v1946_v59 = vpop.f32.mrf.mxu1 }
 0x10d   : > { %v1251_v63 = vpop.f32.mrf.mxu0  ;;  %v1135_v37 = vadd.f32 %v1946_v59, %v988_v24  ;;  %v1280_v43 = vadd.f32 %v1241_v54, %v1132_v29 }
 0x10e   : > { %v1103_v1 = vpop.f32.mrf.mxu1 }
 0x10f   : > { %v1963_v4 = vpop.f32.mrf.mxu0  ;;  %v1134_v50 = vadd.f32 %v1103_v1, %v987_v35  ;;  %v1283_v47 = vadd.f32 %v1960_v58, %v1135_v37 }
 0x110   : > { %v1949_v6 = vpop.f32.mrf.mxu1 }
 0x111   : > { %v1261_v10 = vpop.f32.mrf.mxu0  ;;  %v1137_v45 = vadd.f32 %v1949_v6, %v990_v41  ;;  %v1282_v60 = vadd.f32 %v1251_v63, %v1134_v50 }
 0x112   : > { %v1113_v14 = vpop.f32.mrf.mxu1 }
 0x113   : > { %v2277_v16 = vpop.f32.mrf.mxu0  ;;  %v1136_v57 = vadd.f32 %v1113_v14, %v989_v30  ;;  %v1285_v58 = vadd.f32 %v1963_v4, %v1137_v45 }
 0x114   : > { %v1952_v27 = vpop.f32.mrf.mxu1 }
 0x115   : > { %v2282_v34 = vpop.f32.mrf.mxu0  ;;  %v1139_v2 = vadd.f32 %v1952_v27, %v992_v56  ;;  %v1284_v6 = vadd.f32 %v1261_v10, %v1136_v57 }
 0x116   : > { %v1123_v31 = vpop.f32.mrf.mxu1 }
 0x117   : > { %v1985_v39 = vpop.f32.mrf.mxu0  ;;  %v1138_v9 = vadd.f32 %v1123_v31, %v991_v49  ;;  %v1287_v21 = vadd.f32 %v2277_v16, %v1139_v2 }
 0x118   : > { %v1971_v33 = vpop.f32.mrf.mxu1 }
 0x119   : > { %v1428_v52 = vadd.f32 %v1971_v33, %v1281_v36  ;;  %v1535_v38 = vpop.f32.mrf.mxu0  ;;  %v1286_v25 = vadd.f32 %v2282_v34, %v1138_v9  ;;  %v1611_v34 = vpop.permute.xlu0 %1610 }
 0x11a   : > { %v1388_v32 = vpop.f32.mrf.mxu1 }
 0x11b   : > { %v1575_v51 = vadd.f32 %v1985_v39, %v1428_v52  ;;  %v1427_v54 = vadd.f32 %v1388_v32, %v1280_v43  ;;  %v1988_v55 = vpop.f32.mrf.mxu0 }
 0x11c   : > { %v1974_v59 = vpop.f32.mrf.mxu1 }
 0x11d   : > { %1583 = vst [vmem:[%s2290_s23 + $0x8] sm:$0xff] %v1575_v51  ;;  %v1574_v61 = vadd.f32 %v1535_v38, %v1427_v54  ;;  %v1623_v62 = vadd.f32 %v1601_v53, %v1575_v51  ;;  %v1430_v0 = vadd.f32 %v1974_v59, %v1283_v47  ;;  %v1545_v44 = vpop.f32.mrf.mxu0 }
 0x11e   : > { %v1398_v1 = vpop.f32.mrf.mxu1 }
 0x11f   : > { %1582 = vst [vmem:[%s2290_s23] sm:$0xff] %v1574_v61  ;;  %v1622_v3 = vadd.f32 %v1599_v23, %v1574_v61  ;;  %1631 = vst.msk [vmem:[%s2290_s23 + $0x8] sm:$0xff] %vm244_vm0, %v1623_v62  ;;  %v1577_v46 = vadd.f32 %v1988_v55, %v1430_v0  ;;  %v1429_v5 = vadd.f32 %v1398_v1, %v1282_v60  ;;  %v1991_v63 = vpop.f32.mrf.mxu0 }
 0x120   : > { %v1977_v7 = vpop.f32.mrf.mxu1 }
 0x121   : > { %1630 = vst.msk [vmem:[%s2290_s23] sm:$0xff] %vm244_vm0, %v1622_v3  ;;  %1585 = vst [vmem:[%s2290_s23 + $0x18] sm:$0xff] %v1577_v46  ;;  %v1576_v48 = vadd.f32 %v1545_v44, %v1429_v5  ;;  %v1625_v4 = vadd.f32 %v1605_v42, %v1577_v46  ;;  %v1432_v12 = vadd.f32 %v1977_v7, %v1285_v58  ;;  %v1555_v18 = vpop.f32.mrf.mxu0 }
 0x122   : > { %v1408_v14 = vpop.f32.mrf.mxu1 }
 0x123   : > { %1584 = vst [vmem:[%s2290_s23 + $0x10] sm:$0xff] %v1576_v48  ;;  %v1624_v10 = vadd.f32 %v2280_v13, %v1576_v48  ;;  %1633 = vst.msk [vmem:[%s2290_s23 + $0x18] sm:$0xff] %vm244_vm0, %v1625_v4  ;;  %v1579_v20 = vadd.f32 %v1991_v63, %v1432_v12  ;;  %v1431_v23 = vadd.f32 %v1408_v14, %v1284_v6  ;;  %v1994_v22 = vpop.f32.mrf.mxu0  ;;  %v1613_v13 = vpop.permute.xlu1 %1612 }
 0x124   : > { %v1980_v11 = vpop.f32.mrf.mxu1 }
 0x125   : > { %1632 = vst.msk [vmem:[%s2290_s23 + $0x10] sm:$0xff] %vm244_vm0, %v1624_v10  ;;  %1587 = vst [vmem:[%s2290_s23 + $0x28] sm:$0xff] %v1579_v20  ;;  %v1578_v27 = vadd.f32 %v1555_v18, %v1431_v23  ;;  %v1627_v16 = vadd.f32 %v1609_v8, %v1579_v20  ;;  %v1434_v24 = vadd.f32 %v1980_v11, %v1287_v21  ;;  %v1565_v35 = vpop.f32.mrf.mxu0 }
 0x126   : > { %v1418_v29 = vpop.f32.mrf.mxu1 }
 0x127   : > { %1586 = vst [vmem:[%s2290_s23 + $0x20] sm:$0xff] %v1578_v27  ;;  %1635 = vst.msk [vmem:[%s2290_s23 + $0x28] sm:$0xff] %vm244_vm0, %v1627_v16  ;;  %v1581_v26 = vadd.f32 %v1994_v22, %v1434_v24  ;;  %v1626_v15 = vadd.f32 %v1607_v19, %v1578_v27  ;;  %v1433_v31 = vadd.f32 %v1418_v29, %v1286_v25 }
 0x129   : > { %1589 = vst [vmem:[%s2290_s23 + $0x38] sm:$0xff] %v1581_v26  ;;  %1634 = vst.msk [vmem:[%s2290_s23 + $0x20] sm:$0xff] %vm244_vm0, %v1626_v15  ;;  %v1580_v36 = vadd.f32 %v1565_v35, %v1433_v31  ;;  %v1629_v37 = vadd.f32 %v1613_v13, %v1581_v26 }
 0x12b   : > { %1588 = vst [vmem:[%s2290_s23 + $0x30] sm:$0xff] %v1580_v36  ;;  %1637 = vst.msk [vmem:[%s2290_s23 + $0x38] sm:$0xff] %vm244_vm0, %v1629_v37  ;;  %v1628_v39 = vadd.f32 %v1611_v34, %v1580_v36 }
 0x12d   : > { %1636 = vst.msk [vmem:[%s2290_s23 + $0x30] sm:$0xff] %vm244_vm0, %v1628_v39 }
 0x12e PF: > { %s14_s15 = sadd.s32 1, %s2013_s15  }
 0x12f   : > { %p11_p4 = scmp.ge.s32.totalorder %s14_s15, 4  }
 0x131   :  { %13 = sbr.rel (!%p11_p4) target bundleno = 1 (0x1), region = 76 }

</bundles_post_ra>
